<compile_context>
chip_gen: v7x
topology: tpu7x:2x2x1
jax: 0.10.0
libtpu: 0.0.40
codegen_flags: <defaults>
</compile_context>

<pallas_src>
import jax
import jax.numpy as jnp
from jax.experimental import pallas as pl
from jax.experimental.pallas import tpu as pltpu

# ----------------------------- model hyper-params -----------------------------
XIN = 16                 # x feature dim
YIN = 8                  # y feature dim
HIDDEN = 32              # hidden_channels
Y_CAT = 16               # y_cat_dim
H_OUT1 = HIDDEN // 2     # 16
H_OUT2 = 10
P16 = 16                 # padded width for the f_out tail (>= H_OUT2)
EPS = 1e-5

CAT_IN = XIN + YIN       # 24  ([x | y])
H2 = 2 * HIDDEN          # 64  (both branches' hidden, side by side)

BATCH = 256
TILE_N = 128             # rows per grid step (multiple of 128 -> lane-dense output)


# --------------------------------- kernel -------------------------------------
def _nnest_kernel(xy_ref, w1_ref, wpk_ref, vec_ref, out_ref):
    f32 = jnp.float32
    bf16 = jnp.bfloat16

    xy = xy_ref[...]                      # (TILE_N, 24) bf16
    w1 = w1_ref[...]                      # (24, 64)     bf16  block-diagonal layer-1
    wpk = wpk_ref[...]                    # (96, 16)     bf16  [W2_stacked; o_w1; o_w2_pad]
    vec = vec_ref[...]                    # (8, 64)      f32   bias / LN / w3 pack

    b1    = vec[0:1, :]                   # (1, 64) layer-1 bias  [f1 | f2]
    gamma = vec[1:2, :]                   # (1, 64) LN weight     [f1 | f2]
    beta  = vec[2:3, :]                   # (1, 64) LN bias       [f1 | f2]
    b2    = vec[3:4, :Y_CAT]              # (1, 16) f1_b2 + f2_b2
    ob1   = vec[4:5, :P16]                # (1, 16)
    ob2   = vec[5:6, :P16]                # (1, 16) (lanes >= 10 are zero)
    w3r   = vec[6:7, :P16]                # (1, 16) o_w3 as a row (lanes >= 10 zero)
    ob3   = vec[7:8, 0:1]                 # (1, 1)

    # ---- fused layer-1 of both branches (block-diagonal weight) -------------
    h = jnp.dot(xy, w1, preferred_element_type=f32) + b1          # (TILE_N, 64) f32

    # ---- per-branch LayerNorm over each 32-lane half (masked statistics) ----
    lane = jax.lax.broadcasted_iota(jnp.int32, h.shape, 1)
    is_a = lane < HIDDEN
    inv_h = 1.0 / HIDDEN
    sum_a = jnp.sum(jnp.where(is_a, h, 0.0), axis=-1, keepdims=True)
    sum_b = jnp.sum(jnp.where(is_a, 0.0, h), axis=-1, keepdims=True)
    mu = jnp.where(is_a, sum_a * inv_h, sum_b * inv_h)
    d = h - mu
    d2 = d * d
    var_a = jnp.sum(jnp.where(is_a, d2, 0.0), axis=-1, keepdims=True)
    var_b = jnp.sum(jnp.where(is_a, 0.0, d2), axis=-1, keepdims=True)
    var = jnp.where(is_a, var_a * inv_h, var_b * inv_h)
    h = d * jax.lax.rsqrt(var + EPS) * gamma + beta
    h = jnp.maximum(h, 0.0)

    # ---- fused layer-2 + branch add (vertically stacked weight) -------------
    w2 = wpk[0:H2, :]                                             # (64, 16)
    z = jnp.dot(h.astype(bf16), w2, preferred_element_type=f32) + b2   # (TILE_N, 16)

    # ---- f_out head ----------------------------------------------------------
    ow1 = wpk[H2:H2 + Y_CAT, :]                                   # (16, 16)
    h1 = jnp.maximum(
        jnp.dot(z.astype(bf16), ow1, preferred_element_type=f32) + ob1, 0.0)
    ow2 = wpk[H2 + Y_CAT:, :]                                     # (16, 16) zero-padded cols
    h2 = jnp.maximum(
        jnp.dot(h1.astype(bf16), ow2, preferred_element_type=f32) + ob2, 0.0)

    # final Linear(10, 1): (1, 16) @ (16, TILE_N) -> lane-dense (1, TILE_N)
    out = jnp.dot(w3r, h2.T, preferred_element_type=f32) + ob3
    out_ref[...] = out.astype(out_ref.dtype).reshape(1, 1, TILE_N)


# --------------------------------- wrapper ------------------------------------
@jax.jit
def nnest_forward(x, y, packed):
    w1_bd, w_pack, vec = packed
    n = x.shape[0]
    assert n % TILE_N == 0, "batch must be a multiple of TILE_N"
    grid = n // TILE_N

    xy = jnp.concatenate([x, y], axis=-1).astype(jnp.bfloat16)    # (n, 24) bf16 in HBM

    out = pl.pallas_call(
        _nnest_kernel,
        out_shape=jax.ShapeDtypeStruct((grid, 1, TILE_N), jnp.float32),
        grid_spec=pltpu.PrefetchScalarGridSpec(
            num_scalar_prefetch=0,
            grid=(grid,),
            in_specs=[
                pl.BlockSpec((TILE_N, CAT_IN), lambda i: (i, 0)),          # xy rows
                pl.BlockSpec((CAT_IN, H2), lambda i: (0, 0)),              # W1 (block-diag)
                pl.BlockSpec((H2 + Y_CAT + H_OUT1, P16), lambda i: (0, 0)),# packed weights
                pl.BlockSpec((8, H2), lambda i: (0, 0)),                   # bias/LN/w3 pack
            ],
            out_specs=pl.BlockSpec((1, 1, TILE_N), lambda i: (i, 0, 0)),
        ),
        compiler_params=pltpu.CompilerParams(
            dimension_semantics=("parallel",)),
    )(xy, w1_bd, w_pack, vec)

    return out.reshape(n, 1)


# ------------------------------ param creation --------------------------------
def init_params(key):
    ks = jax.random.split(key, 16)

    def lin(k, fan_in, fan_out):
        bound = 1.0 / jnp.sqrt(fan_in)
        w = jax.random.uniform(k, (fan_in, fan_out), jnp.float32, -bound, bound)
        b = jax.random.uniform(jax.random.fold_in(k, 1), (1, fan_out),
                               jnp.float32, -bound, bound)
        return w, b

    # f1: Linear(XIN,HIDDEN) + LayerNorm(HIDDEN) + Linear(HIDDEN,Y_CAT)
    f1_w1, f1_b1 = lin(ks[0], XIN, HIDDEN)
    f1_g = jnp.ones((1, HIDDEN), jnp.float32)
    f1_be = jnp.zeros((1, HIDDEN), jnp.float32)
    f1_w2, f1_b2 = lin(ks[1], HIDDEN, Y_CAT)

    # f2: Linear(YIN,HIDDEN) + LayerNorm(HIDDEN) + Linear(HIDDEN,Y_CAT)
    f2_w1, f2_b1 = lin(ks[2], YIN, HIDDEN)
    f2_g = jnp.ones((1, HIDDEN), jnp.float32)
    f2_be = jnp.zeros((1, HIDDEN), jnp.float32)
    f2_w2, f2_b2 = lin(ks[3], HIDDEN, Y_CAT)

    # f_out
    o_w1, o_b1 = lin(ks[4], Y_CAT, H_OUT1)
    o_w2, o_b2 = lin(ks[5], H_OUT1, H_OUT2)
    o_w3, o_b3 = lin(ks[6], H_OUT2, 1)

    return (f1_w1, f1_b1, f1_g, f1_be, f1_w2, f1_b2,
            f2_w1, f2_b1, f2_g, f2_be, f2_w2, f2_b2,
            o_w1, o_b1, o_w2, o_b2, o_w3, o_b3)


def pack_params(params):
    """Pack the 18 module parameters into 3 kernel operands."""
    (f1_w1, f1_b1, f1_g, f1_be, f1_w2, f1_b2,
     f2_w1, f2_b1, f2_g, f2_be, f2_w2, f2_b2,
     o_w1, o_b1, o_w2, o_b2, o_w3, o_b3) = params

    # block-diagonal layer-1 weight: [x | y] (24) -> [branch1 | branch2] (64)
    w1_bd = jnp.zeros((CAT_IN, H2), jnp.float32)
    w1_bd = w1_bd.at[:XIN, :HIDDEN].set(f1_w1)
    w1_bd = w1_bd.at[XIN:, HIDDEN:].set(f2_w1)

    # stacked layer-2 weight (fuses the f1+f2 add) + f_out weights (o_w2 padded 10->16)
    o_w2_p = jnp.zeros((H_OUT1, P16), jnp.float32).at[:, :H_OUT2].set(o_w2)
    w_pack = jnp.concatenate(
        [jnp.concatenate([f1_w2, f2_w2], axis=0),   # (64, 16)
         o_w1,                                      # (16, 16)
         o_w2_p],                                   # (16, 16)
        axis=0)                                     # (96, 16)

    # bias / LayerNorm / w3 vector pack: one quantity per row, zero padded to 64 lanes
    vec = jnp.zeros((8, H2), jnp.float32)
    vec = vec.at[0, :].set(jnp.concatenate([f1_b1[0], f2_b1[0]]))
    vec = vec.at[1, :].set(jnp.concatenate([f1_g[0], f2_g[0]]))
    vec = vec.at[2, :].set(jnp.concatenate([f1_be[0], f2_be[0]]))
    vec = vec.at[3, :Y_CAT].set(f1_b2[0] + f2_b2[0])
    vec = vec.at[4, :H_OUT1].set(o_b1[0])
    vec = vec.at[5, :H_OUT2].set(o_b2[0])
    vec = vec.at[6, :H_OUT2].set(o_w3[:, 0])
    vec = vec.at[7, 0].set(o_b3[0, 0])

    return (w1_bd.astype(jnp.bfloat16),
            w_pack.astype(jnp.bfloat16),
            vec)


# ------------------------------ pure-JAX reference -----------------------------
def nnest_reference(x, y, params):
    (f1_w1, f1_b1, f1_g, f1_be, f1_w2, f1_b2,
     f2_w1, f2_b1, f2_g, f2_be, f2_w2, f2_b2,
     o_w1, o_b1, o_w2, o_b2, o_w3, o_b3) = params

    def branch(inp, w1, b1, g, be, w2, b2):
        h = inp @ w1 + b1
        mu = h.mean(-1, keepdims=True)
        var = ((h - mu) ** 2).mean(-1, keepdims=True)
        h = (h - mu) * jax.lax.rsqrt(var + EPS) * g + be
        h = jnp.maximum(h, 0.0)
        return h @ w2 + b2

    z = branch(x, f1_w1, f1_b1, f1_g, f1_be, f1_w2, f1_b2) \
      + branch(y, f2_w1, f2_b1, f2_g, f2_be, f2_w2, f2_b2)
    h = jnp.maximum(z @ o_w1 + o_b1, 0.0)
    h = jnp.maximum(h @ o_w2 + o_b2, 0.0)
    return h @ o_w3 + o_b3


# ----------------------------------- main --------------------------------------
if __name__ == "__main__":
    key = jax.random.PRNGKey(0)
    kx, ky, kp = jax.random.split(key, 3)

    x = jax.random.normal(kx, (BATCH, XIN), jnp.float32)
    y = jax.random.normal(ky, (BATCH, YIN), jnp.float32)
    params = init_params(kp)
    packed = pack_params(params)

    out = nnest_forward(x, y, packed)
    out = jax.block_until_ready(out)

    ref = nnest_reference(x, y, params)
    assert out.shape == (BATCH, 1)
    max_err = jnp.max(jnp.abs(out - ref))
    # bf16 matmul inputs (per perf review) loosen the tolerance vs. the pure f32 ref.
    assert jnp.allclose(out, ref, atol=5e-2, rtol=5e-2), f"max abs err {max_err}"

    print("KERNEL_OK")
</pallas_src>

<mosaic_0001>
module attributes {stable_mosaic.version = 11 : i64} {
  func.func @_nnest_kernel(%arg0: i32, %arg1: memref<128x24xbf16, #tpu.memory_space<vmem>>, %arg2: memref<24x64xbf16, #tpu.memory_space<vmem>>, %arg3: memref<96x16xbf16, #tpu.memory_space<vmem>>, %arg4: memref<8x64xf32, #tpu.memory_space<vmem>>, %arg5: memref<1x1x128xf32, #tpu.memory_space<vmem>>) attributes {dimension_semantics = [#tpu.dimension_semantics<parallel>], iteration_bounds = array<i64: 2>, scalar_prefetch = 0 : i64, scratch_operands = 0 : i64, tpu.core_type = #tpu.core_type<tc>, window_params = [{transform_indices = @transform_0, window_bounds = array<i64: 128, 24>}, {pipeline_mode = #tpu.pipeline_mode<synchronous>, transform_indices = @transform_1, window_bounds = array<i64: 24, 64>}, {pipeline_mode = #tpu.pipeline_mode<synchronous>, transform_indices = @transform_2, window_bounds = array<i64: 96, 16>}, {pipeline_mode = #tpu.pipeline_mode<synchronous>, transform_indices = @transform_3, window_bounds = array<i64: 8, 64>}, {transform_indices = @transform_4, window_bounds = array<i64: 1, 1, 128>}]} {
    %c0 = arith.constant 0 : index
    %c0_0 = arith.constant 0 : index
    %0 = vector.load %arg1[%c0, %c0_0] : memref<128x24xbf16, #tpu.memory_space<vmem>>, vector<128x24xbf16>
    %c0_1 = arith.constant 0 : index
    %c0_2 = arith.constant 0 : index
    %1 = vector.load %arg2[%c0_1, %c0_2] : memref<24x64xbf16, #tpu.memory_space<vmem>>, vector<24x64xbf16>
    %c0_3 = arith.constant 0 : index
    %c0_4 = arith.constant 0 : index
    %2 = vector.load %arg3[%c0_3, %c0_4] : memref<96x16xbf16, #tpu.memory_space<vmem>>, vector<96x16xbf16>
    %c0_5 = arith.constant 0 : index
    %c0_6 = arith.constant 0 : index
    %3 = vector.load %arg4[%c0_5, %c0_6] : memref<8x64xf32, #tpu.memory_space<vmem>>, vector<8x64xf32>
    %4 = vector.extract_strided_slice %3 {offsets = [0, 0], sizes = [1, 64], strides = [1, 1]} : vector<8x64xf32> to vector<1x64xf32>
    %5 = vector.extract_strided_slice %3 {offsets = [1, 0], sizes = [1, 64], strides = [1, 1]} : vector<8x64xf32> to vector<1x64xf32>
    %6 = vector.extract_strided_slice %3 {offsets = [2, 0], sizes = [1, 64], strides = [1, 1]} : vector<8x64xf32> to vector<1x64xf32>
    %7 = vector.extract_strided_slice %3 {offsets = [3, 0], sizes = [1, 16], strides = [1, 1]} : vector<8x64xf32> to vector<1x16xf32>
    %8 = vector.extract_strided_slice %3 {offsets = [4, 0], sizes = [1, 16], strides = [1, 1]} : vector<8x64xf32> to vector<1x16xf32>
    %9 = vector.extract_strided_slice %3 {offsets = [5, 0], sizes = [1, 16], strides = [1, 1]} : vector<8x64xf32> to vector<1x16xf32>
    %10 = vector.extract_strided_slice %3 {offsets = [6, 0], sizes = [1, 16], strides = [1, 1]} : vector<8x64xf32> to vector<1x16xf32>
    %11 = vector.extract_strided_slice %3 {offsets = [7, 0], sizes = [1, 1], strides = [1, 1]} : vector<8x64xf32> to vector<1x1xf32>
    %cst = arith.constant dense<0.000000e+00> : vector<128x64xf32>
    %12 = tpu.matmul %0, %1, %cst {dimension_numbers = #tpu.dot_dimension_numbers<[1], [0], [0], [1], [0, 0, 1, 1], [], []>} : vector<128x24xbf16>, vector<24x64xbf16>, vector<128x64xf32> -> vector<128x64xf32>
    %13 = vector.broadcast %4 : vector<1x64xf32> to vector<128x64xf32>
    %14 = arith.addf %12, %13 : vector<128x64xf32>
    %15 = tpu.iota {dimensions = array<i32: 1>} : vector<128x64xi32>
    %c32_i32 = arith.constant 32 : i32
    %16 = vector.broadcast %c32_i32 : i32 to vector<128x64xi32>
    %17 = arith.cmpi slt, %15, %16 : vector<128x64xi32>
    %cst_7 = arith.constant 0.000000e+00 : f32
    %18 = vector.broadcast %cst_7 : f32 to vector<128x64xf32>
    %19 = arith.select %17, %14, %18 : vector<128x64xi1>, vector<128x64xf32>
    %cst_8 = arith.constant dense<0.000000e+00> : vector<128xf32>
    %20 = vector.multi_reduction <add>, %19, %cst_8 [1] : vector<128x64xf32> to vector<128xf32>
    %21 = vector.shape_cast %20 : vector<128xf32> to vector<128x1xf32>
    %cst_9 = arith.constant 0.000000e+00 : f32
    %22 = vector.broadcast %cst_9 : f32 to vector<128x64xf32>
    %23 = arith.select %17, %22, %14 : vector<128x64xi1>, vector<128x64xf32>
    %cst_10 = arith.constant dense<0.000000e+00> : vector<128xf32>
    %24 = vector.multi_reduction <add>, %23, %cst_10 [1] : vector<128x64xf32> to vector<128xf32>
    %25 = vector.shape_cast %24 : vector<128xf32> to vector<128x1xf32>
    %cst_11 = arith.constant 3.125000e-02 : f32
    %26 = vector.broadcast %cst_11 : f32 to vector<128x1xf32>
    %27 = arith.mulf %21, %26 : vector<128x1xf32>
    %cst_12 = arith.constant 3.125000e-02 : f32
    %28 = vector.broadcast %cst_12 : f32 to vector<128x1xf32>
    %29 = arith.mulf %25, %28 : vector<128x1xf32>
    %30 = vector.shape_cast %27 : vector<128x1xf32> to vector<128x1xf32>
    %31 = vector.broadcast %30 : vector<128x1xf32> to vector<128x64xf32>
    %32 = vector.shape_cast %29 : vector<128x1xf32> to vector<128x1xf32>
    %33 = vector.broadcast %32 : vector<128x1xf32> to vector<128x64xf32>
    %34 = arith.select %17, %31, %33 : vector<128x64xi1>, vector<128x64xf32>
    %35 = arith.subf %14, %34 : vector<128x64xf32>
    %36 = arith.mulf %35, %35 : vector<128x64xf32>
    %cst_13 = arith.constant 0.000000e+00 : f32
    %37 = vector.broadcast %cst_13 : f32 to vector<128x64xf32>
    %38 = arith.select %17, %36, %37 : vector<128x64xi1>, vector<128x64xf32>
    %cst_14 = arith.constant dense<0.000000e+00> : vector<128xf32>
    %39 = vector.multi_reduction <add>, %38, %cst_14 [1] : vector<128x64xf32> to vector<128xf32>
    %40 = vector.shape_cast %39 : vector<128xf32> to vector<128x1xf32>
    %cst_15 = arith.constant 0.000000e+00 : f32
    %41 = vector.broadcast %cst_15 : f32 to vector<128x64xf32>
    %42 = arith.select %17, %41, %36 : vector<128x64xi1>, vector<128x64xf32>
    %cst_16 = arith.constant dense<0.000000e+00> : vector<128xf32>
    %43 = vector.multi_reduction <add>, %42, %cst_16 [1] : vector<128x64xf32> to vector<128xf32>
    %44 = vector.shape_cast %43 : vector<128xf32> to vector<128x1xf32>
    %cst_17 = arith.constant 3.125000e-02 : f32
    %45 = vector.broadcast %cst_17 : f32 to vector<128x1xf32>
    %46 = arith.mulf %40, %45 : vector<128x1xf32>
    %cst_18 = arith.constant 3.125000e-02 : f32
    %47 = vector.broadcast %cst_18 : f32 to vector<128x1xf32>
    %48 = arith.mulf %44, %47 : vector<128x1xf32>
    %49 = vector.shape_cast %46 : vector<128x1xf32> to vector<128x1xf32>
    %50 = vector.broadcast %49 : vector<128x1xf32> to vector<128x64xf32>
    %51 = vector.shape_cast %48 : vector<128x1xf32> to vector<128x1xf32>
    %52 = vector.broadcast %51 : vector<128x1xf32> to vector<128x64xf32>
    %53 = arith.select %17, %50, %52 : vector<128x64xi1>, vector<128x64xf32>
    %cst_19 = arith.constant 9.99999974E-6 : f32
    %54 = vector.broadcast %cst_19 : f32 to vector<128x64xf32>
    %55 = arith.addf %53, %54 : vector<128x64xf32>
    %56 = math.rsqrt %55 : vector<128x64xf32>
    %57 = arith.mulf %35, %56 : vector<128x64xf32>
    %58 = vector.broadcast %5 : vector<1x64xf32> to vector<128x64xf32>
    %59 = arith.mulf %57, %58 : vector<128x64xf32>
    %60 = vector.broadcast %6 : vector<1x64xf32> to vector<128x64xf32>
    %61 = arith.addf %59, %60 : vector<128x64xf32>
    %cst_20 = arith.constant 0.000000e+00 : f32
    %62 = vector.broadcast %cst_20 : f32 to vector<128x64xf32>
    %63 = arith.maximumf %61, %62 : vector<128x64xf32>
    %64 = vector.extract_strided_slice %2 {offsets = [0, 0], sizes = [64, 16], strides = [1, 1]} : vector<96x16xbf16> to vector<64x16xbf16>
    %65 = arith.truncf %63 : vector<128x64xf32> to vector<128x64xbf16>
    %cst_21 = arith.constant dense<0.000000e+00> : vector<128x16xf32>
    %66 = tpu.matmul %65, %64, %cst_21 {dimension_numbers = #tpu.dot_dimension_numbers<[1], [0], [0], [1], [0, 0, 1, 1], [], []>} : vector<128x64xbf16>, vector<64x16xbf16>, vector<128x16xf32> -> vector<128x16xf32>
    %67 = vector.broadcast %7 : vector<1x16xf32> to vector<128x16xf32>
    %68 = arith.addf %66, %67 : vector<128x16xf32>
    %69 = vector.extract_strided_slice %2 {offsets = [64, 0], sizes = [16, 16], strides = [1, 1]} : vector<96x16xbf16> to vector<16x16xbf16>
    %70 = arith.truncf %68 : vector<128x16xf32> to vector<128x16xbf16>
    %cst_22 = arith.constant dense<0.000000e+00> : vector<128x16xf32>
    %71 = tpu.matmul %70, %69, %cst_22 {dimension_numbers = #tpu.dot_dimension_numbers<[1], [0], [0], [1], [0, 0, 1, 1], [], []>} : vector<128x16xbf16>, vector<16x16xbf16>, vector<128x16xf32> -> vector<128x16xf32>
    %72 = vector.broadcast %8 : vector<1x16xf32> to vector<128x16xf32>
    %73 = arith.addf %71, %72 : vector<128x16xf32>
    %cst_23 = arith.constant 0.000000e+00 : f32
    %74 = vector.broadcast %cst_23 : f32 to vector<128x16xf32>
    %75 = arith.maximumf %73, %74 : vector<128x16xf32>
    %76 = vector.extract_strided_slice %2 {offsets = [80, 0], sizes = [16, 16], strides = [1, 1]} : vector<96x16xbf16> to vector<16x16xbf16>
    %77 = arith.truncf %75 : vector<128x16xf32> to vector<128x16xbf16>
    %cst_24 = arith.constant dense<0.000000e+00> : vector<128x16xf32>
    %78 = tpu.matmul %77, %76, %cst_24 {dimension_numbers = #tpu.dot_dimension_numbers<[1], [0], [0], [1], [0, 0, 1, 1], [], []>} : vector<128x16xbf16>, vector<16x16xbf16>, vector<128x16xf32> -> vector<128x16xf32>
    %79 = vector.broadcast %9 : vector<1x16xf32> to vector<128x16xf32>
    %80 = arith.addf %78, %79 : vector<128x16xf32>
    %cst_25 = arith.constant 0.000000e+00 : f32
    %81 = vector.broadcast %cst_25 : f32 to vector<128x16xf32>
    %82 = arith.maximumf %80, %81 : vector<128x16xf32>
    %83 = tpu.transpose %82, [1, 0] : vector<128x16xf32> -> vector<16x128xf32>
    %cst_26 = arith.constant dense<0.000000e+00> : vector<1x128xf32>
    %84 = tpu.matmul %10, %83, %cst_26 {dimension_numbers = #tpu.dot_dimension_numbers<[1], [0], [0], [1], [0, 0, 1, 1], [], []>} : vector<1x16xf32>, vector<16x128xf32>, vector<1x128xf32> -> vector<1x128xf32>
    %85 = vector.broadcast %11 : vector<1x1xf32> to vector<1x128xf32>
    %86 = arith.addf %84, %85 : vector<1x128xf32>
    %87 = vector.shape_cast %86 : vector<1x128xf32> to vector<1x1x128xf32>
    %c0_27 = arith.constant 0 : index
    %c0_28 = arith.constant 0 : index
    %c0_29 = arith.constant 0 : index
    %88 = vector.load %arg5[%c0_27, %c0_28, %c0_29] : memref<1x1x128xf32, #tpu.memory_space<vmem>>, vector<1x1x128xf32>
    tpu.vector_store %arg5[%c0_27, %c0_28, %c0_29], %87 {strides = array<i32>} : memref<1x1x128xf32, #tpu.memory_space<vmem>>, vector<1x1x128xf32>,
    return
  }
  func.func @transform_0(%arg0: i32) -> (i32, i32) {
    %c0_i32 = arith.constant 0 : i32
    %c0_i32_0 = arith.constant 0 : i32
    return %arg0, %c0_i32 : i32, i32
  }
  func.func @transform_1(%arg0: i32) -> (i32, i32) {
    %c0_i32 = arith.constant 0 : i32
    %c0_i32_0 = arith.constant 0 : i32
    %c0_i32_1 = arith.constant 0 : i32
    return %c0_i32, %c0_i32_0 : i32, i32
  }
  func.func @transform_2(%arg0: i32) -> (i32, i32) {
    %c0_i32 = arith.constant 0 : i32
    %c0_i32_0 = arith.constant 0 : i32
    %c0_i32_1 = arith.constant 0 : i32
    return %c0_i32, %c0_i32_0 : i32, i32
  }
  func.func @transform_3(%arg0: i32) -> (i32, i32) {
    %c0_i32 = arith.constant 0 : i32
    %c0_i32_0 = arith.constant 0 : i32
    %c0_i32_1 = arith.constant 0 : i32
    return %c0_i32, %c0_i32_0 : i32, i32
  }
  func.func @transform_4(%arg0: i32) -> (i32, i32, i32) {
    %c0_i32 = arith.constant 0 : i32
    %c0_i32_0 = arith.constant 0 : i32
    %c0_i32_1 = arith.constant 0 : i32
    return %arg0, %c0_i32, %c0_i32_0 : i32, i32, i32
  }
}

</mosaic_0001>

<bundles_post_ra>
// kernel: nnest_forward.1
= control target key start
LH: loop header
LB: loop body
LE: loop exit
PB: predicated region body
PF: predicated region fallthrough
CT: control target
= control target key end

     0   :  { %9 = vsyncpa [#allocation3], 0  ;;  %s2748_s0 = inlined_call_operand.vmem [shape: bf16[256,24], index: 0, kind: input, shape index: {}]   ;;  %s2749_s1 = inlined_call_operand.vmem [shape: bf16[24,64], index: 1, kind: input, shape index: {}]   ;;  %s2750_s2 = inlined_call_operand.vmem [shape: bf16[96,16], index: 2, kind: input, shape index: {}]   ;;  %s2751_s3 = inlined_call_operand.vmem [shape: f32[8,64], index: 3, kind: input, shape index: {}]   ;;  %s2752_s4 = inlined_call_operand.hbm [shape: f32[2,1,128], index: 4, kind: output, shape index: {}]  }
   0x1   :  { %11 = vsyncpa [#allocation3 + $0x1], 0  ;;  %s2036_s15 = smov 0   ;;  %s2038_s16 = smov 0  }
   0x2   :  { %s2040_s17 = smov 0   ;;  %s2042_s18 = smov 0  }
   0x3 LB: > { %s1564_s19 = sadd.s32 4294967295, %s2004_s18   ;;  %s1565_s20 = sadd.s32 4294967294, %s2004_s18   ;;  %s2004_s18 = sphi %s2042_s18, %s2760_s18   ;;  %s2000_s17 = sphi %s2040_s17, %s2759_s17   ;;  %s1996_s16 = sphi %s2038_s16, %s2758_s16   ;;  %s1992_s15 = sphi %s2036_s15, %s2757_s15  }
   0x4   : > { %s2059_s21 = sadd.s32 1, %s2004_s18   ;;  %s113_s22 = sadd.s32 1, %s2000_s17 }
   0x5   : > { %s110_s23 = ssub.s32 %s2004_s18, %s2059_s21  ;;  %p123_p0 = scmp.ne.s32.totalorder %s2000_s17, %s1996_s16 }
   0x6   : > { %p111_p1 = scmp.eq.s32.totalorder %s110_s23, 0  ;;  %p124_p2 = scmp.eq.s32.totalorder %s1564_s19, 1 }
   0x7   : > { %p129_p3 = scmp.ne.s32.totalorder %s1996_s16, %s1992_s15  ;;  %p130_p4 = scmp.eq.s32.totalorder %s1565_s20, 1 }
   0x8   : > { %s2069_s24 = scalar_select %p111_p1, %s2000_s17, %s113_s22  }
   0x9   : > { %p2071_p5 = por %p124_p2, %p123_p0  ;;  %p2075_p6 = por %p130_p4, %p129_p3 }
   0xa   : > { %p1568_p7 = scmp.ge.s32.totalorder %s2004_s18, 1  ;;  %p166_p8 = scmp.lt.s32.totalorder %s2004_s18, 3 }
   0xc   : > { %p167_p9 = pnand %p1568_p7, %p166_p8 }
   0xd   : > { %v1893_v0 = vld [vmem:[%s2749_s1] sm:$0xff] (!%p167_p9)   ;;  %v1894_v1 = vld [vmem:[%s2749_s1 + $0x8] ss:$0 sps:$4 sm:$0xff] (!%p167_p9)   ;;  %vm308_vm0 = vcmask (!%p167_p9), 1043456   ;;  %s2087_s5 = sshll.u32 (!%p167_p9), %s1564_s19, 4  ;;  %vm283_vm1 = vcmask (!%p167_p9), 195584   ;;  %v230_v11 = vlaneseq (!%p167_p9) }
   0xe   : > { %170 = sbr.rel (%p167_p9) target bundleno = 1541 (0x605), region = 36  ;;  %1696 = vmatprep.subr.bf16.mxu0 (!%p167_p9), %v1893_v0  ;;  %p192_p10 = scmp.lt.s32.totalorder (!%p167_p9), %s2087_s5, 31  ;;  %1843 = vmatprep.subr.bf16.mxu1 (!%p167_p9), %v1893_v0  ;;  %v310_v2 = vsel (!%p167_p9), %vm308_vm0, %v1894_v1, 0  ;;  %v2108_v14 = vld [vmem:[%s2751_s3] sm:$0xff] (!%p167_p9)  ;;  %vm428_vm3 = vcmask (!%p167_p9), 523264   ;;  %vm1076_vm4 = vcmask (!%p167_p9), 130048  }
   0xf   : > { %1697 = vmatpush3.bf16.msra.mxu0 (!%p167_p9), %v1893_v0  ;;  %1845 = vmatpush3.bf16.msra.mxu1 (!%p167_p9), %v1893_v0  ;;  %v2102_v12 = vshrl.u32 (!%p167_p9), %v230_v11, 7  ;;  %v2110_v15 = vand.u32 (!%p167_p9), 127, %v230_v11  ;;  %vm2007_vm5 = vmmov (!%p167_p9), 0   ;;  %vm2660_vm6 = vmpackc.low (!%p167_p9), %vm1076_vm4, %vm1076_vm4  ;;  %s2706_s19 = scalar_lea.hbm (!%p167_p9), %s2752_s4, %s2087_s5  ;;  %s2010_s23 = smov (!%p167_p9), [#allocation2]  }
  0x10   : > { %1847 = vmatprep.subr.msk.bf16.mxu0 (!%p167_p9), %vm308_vm0, %v1894_v1  ;;  %1848 = vmatprep.subr.msk.bf16.mxu1 (!%p167_p9), %vm308_vm0, %v1894_v1  ;;  %s1946_s27 = sshll.u32 (!%p167_p9), %s2010_s23, 4  ;;  %s1947_s27 = int_to_ptr.vmem [resolvable:$false] %s1946_s27 }
  0x11   : > { %v232_v13 = vsub.s32 (!%p167_p9), 0, %v2102_v12  ;;  %vm411_vm2 = vcmp.lt.s32.totalorder (!%p167_p9), %v2110_v15, 32  ;;  %s1948_s28 = scalar_lea.vmem (!%p167_p9), %s1947_s27, 32 }
  0x13   : > { %1699 = vmatpush3.bf16.msra.mxu0 (!%p167_p9), %v310_v2  ;;  %1846 = vmatpush3.bf16.msra.mxu1 (!%p167_p9), %v310_v2  ;;  %v2113_v16 = vrot.slane (!%p167_p9), %v2108_v14, %v232_v13 }
  0x15   : > { %s193_s6 = scalar_select %p192_p10, %s2087_s5, 31 }
  0x17   : > { %s1570_s7 = sshll.u32 %s193_s6, 2 }
  0x18   : > { %s195_s10 = scalar_lea.vmem %s2748_s0, %s1570_s7 }
  0x19   : > { %v1895_v3 = vld [vmem:[%s195_s10] sm:$0xff]   ;;  %v1896_v4 = vld [vmem:[%s195_s10 + $0x8] sm:$0xff]   ;;  %v1897_v5 = vld [vmem:[%s195_s10 + $0x10] sm:$0xff]  }
  0x1a   : > { %1700 = vmatprep.mubr.msk.bf16.mxu0 %vm283_vm1, %v1895_v3  ;;  %v1899_v6 = vld [vmem:[%s195_s10 + $0x20] sm:$0xff]   ;;  %v1900_v7 = vld [vmem:[%s195_s10 + $0x28] sm:$0xff]   ;;  %v1901_v8 = vld [vmem:[%s195_s10 + $0x30] sm:$0xff]  }
  0x1b   : > { %1701 = vmatmul.mubr.msk.bf16.vlgmr.msra.gmra.mrb[0].mxu0 %vm283_vm1, %v1896_v4  ;;  %1708 = vmatprep.mubr.msk.bf16.mxu1 %vm283_vm1, %v1899_v6  ;;  %v1898_v9 = vld [vmem:[%s195_s10 + $0x18] sm:$0xff]  }
  0x1c   : > { %1704 = vmatprep.mubr.msk.bf16.mxu0 %vm283_vm1, %v1897_v5  ;;  %1709 = vmatmul.mubr.msk.bf16.vlgmr.msra.gmra.mrb[0].mxu1 %vm283_vm1, %v1900_v7  ;;  %v1902_v10 = vld [vmem:[%s195_s10 + $0x38] sm:$0xff]   ;;  %s189_s10 = sand.u32 1, %s1996_s16  }
  0x1d   : > { %1712 = vmatprep.mubr.msk.bf16.mxu1 %vm283_vm1, %v1901_v8  ;;  %s190_s11 = scalar_lea.vmem [#allocation2], %s189_s10  ;;  %s1498_s20 = scalar_lea.sflag [#allocation3], %s189_s10 }
  0x1e   : > { %s1510_s12 = sshll.u32 %s190_s11, 4  ;;  %s2708_s12 = int_to_ptr.vmem [resolvable:$true] %s1510_s12 }
  0x1f   : > { %s1942_s22 = scalar_lea.vmem %s2708_s12, 16  ;;  %p1949_p0 = scmp.lt.s32.totalorder %s2708_s12, %s1947_s27 }
  0x20   : > { %p1943_p11 = scmp.ne.s32.totalorder %s2708_s12, %s1942_s22  ;;  %p1950_p1 = scmp.lt.s32.totalorder %s1948_s28, %s1942_s22 }
  0x22   : > { %p1944_p12 = pnand %p1943_p11, %p2071_p5  ;;  %p1951_p2 = por %p1950_p1, %p1949_p0 }
  0x23   : > { %1705 = vmatmul.mubr.msk.bf16.gmra.mrb[4].mxu0 %vm283_vm1, %v1898_v9 }
  0x24   : > { %1713 = vmatmul.mubr.msk.bf16.gmra.mrb[4].mxu1 %vm283_vm1, %v1902_v10  ;;  %p1945_p13 = pneg %p1944_p12 }
  0x26   : > { %p1952_p3 = pnand %p1951_p2, %p1945_p13 }
  0xee   : > { %v1702_v17 = vpop.f32.mrb[0].mxu0 }
  0xef   : > { %v2117_v18 = vadd.f32 %v1702_v17, %v2113_v16  ;;  %v346_v19 = vpop.f32.mrb[1].mxu0  ;;  %v2132_v27 = vpop.f32.mrb[0].mxu1 }
  0xf0   : > { %v2120_v20 = vadd.f32 %v346_v19, %v2113_v16  ;;  %v1703_v21 = vpop.f32.mrb[2].mxu0  ;;  %v378_v31 = vpop.f32.mrb[1].mxu1  ;;  %v2225_v19 = vadd.f32 %v2132_v27, %v2113_v16 }
  0xf1   : > { %v2123_v22 = vadd.f32 %v1703_v21, %v2113_v16  ;;  %v349_v23 = vpop.f32.mrb[3].mxu0  ;;  %v414_v24 = vsel %vm411_vm2, %v2117_v18, 0.0  ;;  %v2144_v33 = vpop.f32.mrb[2].mxu1  ;;  %v479_v47 = vsel %vm411_vm2, 0.0, %v2117_v18  ;;  %v2202_v4 = vadd.f32 %v378_v31, %v2113_v16 }
  0xf2   : > { %v435_v25 = vsel %vm428_vm3, %v414_v24, 0.0  ;;  %v477_v26 = vsel %vm411_vm2, 0.0, %v2120_v20  ;;  %v2135_v28 = vadd.f32 %v349_v23, %v2113_v16  ;;  %v412_v30 = vsel %vm411_vm2, %v2120_v20, 0.0  ;;  %v381_v34 = vpop.f32.mrb[3].mxu1 }
  0xf3   : > { %436 = vadd.xlane.f32.xlu0 %v435_v25  ;;  %v493_v29 = vsel %vm428_vm3, %v477_v26, 0.0  ;;  %v415_v32 = vsel %vm411_vm2, %v2123_v22, 0.0  ;;  %v429_v35 = vsel %vm428_vm3, %v412_v30, 0.0  ;;  %v480_v50 = vsel %vm411_vm2, 0.0, %v2123_v22 }
  0xf4   : > { %494 = vadd.xlane.f32.xlu1 %v493_v29  ;;  %v438_v37 = vsel %vm428_vm3, %v415_v32, 0.0  ;;  %v413_v39 = vsel %vm411_vm2, %v2135_v28, 0.0  ;;  %v478_v41 = vsel %vm411_vm2, 0.0, %v2135_v28  ;;  %v499_v54 = vsel %vm428_vm3, %v479_v47, 0.0 }
  0xf5   : > { %v432_v44 = vsel %vm428_vm3, %v413_v39, 0.0  ;;  %v496_v46 = vsel %vm428_vm3, %v478_v41, 0.0  ;;  %v502_v56 = vsel %vm428_vm3, %v480_v50, 0.0  ;;  %v2209_v7 = vadd.f32 %v381_v34, %v2113_v16 }
  0xf6   : > { %v1706_v36 = vpop.f32.mrb[4].mxu0  ;;  %v420_v11 = vsel %vm411_vm2, %v2202_v4, 0.0  ;;  %v485_v23 = vsel %vm411_vm2, 0.0, %v2202_v4  ;;  %v2233_v24 = vadd.f32 %v2144_v33, %v2113_v16  ;;  %v422_v29 = vsel %vm411_vm2, %v2225_v19, 0.0 }
  0xf7   : > { %430 = vadd.xlane.f32.xlu0 %v429_v35  ;;  %v362_v38 = vpop.f32.mrb[5].mxu0  ;;  %v2155_v42 = vadd.f32 %v1706_v36, %v2113_v16  ;;  %v2158_v45 = vpop.f32.mrb[4].mxu1  ;;  %v421_v13 = vsel %vm411_vm2, %v2209_v7, 0.0  ;;  %v453_v17 = vsel %vm428_vm3, %v420_v11, 0.0  ;;  %v486_v25 = vsel %vm411_vm2, 0.0, %v2209_v7 }
  0xf8   : > { %439 = vadd.xlane.f32.xlu1 %v438_v37  ;;  %v1707_v40 = vpop.f32.mrb[6].mxu0  ;;  %v394_v48 = vpop.f32.mrb[5].mxu1  ;;  %v2175_v55 = vadd.f32 %v362_v38, %v2113_v16  ;;  %v456_v21 = vsel %vm428_vm3, %v421_v13, 0.0  ;;  %v517_v26 = vsel %vm428_vm3, %v485_v23, 0.0  ;;  %v520_v27 = vsel %vm428_vm3, %v486_v25, 0.0 }
  0xf9   : > { %v365_v43 = vpop.f32.mrb[7].mxu0  ;;  %v2165_v49 = vadd.f32 %v1707_v40, %v2113_v16  ;;  %v1715_v51 = vpop.f32.mrb[6].mxu1  ;;  %v418_v52 = vsel %vm411_vm2, %v2155_v42, 0.0  ;;  %v483_v6 = vsel %vm411_vm2, 0.0, %v2155_v42  ;;  %v423_v30 = vsel %vm411_vm2, %v2233_v24, 0.0 }
  0xfa   : > { %v397_v53 = vpop.f32.mrb[7].mxu1  ;;  %v2179_v57 = vadd.f32 %v365_v43, %v2113_v16  ;;  %v447_v58 = vsel %vm428_vm3, %v418_v52, 0.0  ;;  %v416_v61 = vsel %vm411_vm2, %v2175_v55, 0.0  ;;  %v481_v1 = vsel %vm411_vm2, 0.0, %v2175_v55 }
  0xfb   : > { %433 = vadd.xlane.f32.xlu0 %v432_v44  ;;  %v419_v59 = vsel %vm411_vm2, %v2165_v49, 0.0  ;;  %v441_v63 = vsel %vm428_vm3, %v416_v61, 0.0  ;;  %v505_v3 = vsel %vm428_vm3, %v481_v1, 0.0  ;;  %v484_v8 = vsel %vm411_vm2, 0.0, %v2165_v49 }
  0xfc   : > { %497 = vadd.xlane.f32.xlu1 %v496_v46  ;;  %v450_v60 = vsel %vm428_vm3, %v419_v59, 0.0  ;;  %v417_v62 = vsel %vm411_vm2, %v2179_v57, 0.0  ;;  %v482_v2 = vsel %vm411_vm2, 0.0, %v2179_v57  ;;  %v511_v9 = vsel %vm428_vm3, %v483_v6, 0.0 }
  0xfd   : > { %v444_v0 = vsel %vm428_vm3, %v417_v62, 0.0  ;;  %v508_v5 = vsel %vm428_vm3, %v482_v2, 0.0  ;;  %v514_v10 = vsel %vm428_vm3, %v484_v8, 0.0  ;;  %v2247_v31 = vadd.f32 %v394_v48, %v2113_v16 }
  0xfe   : > { %v459_v32 = vsel %vm428_vm3, %v422_v29, 0.0  ;;  %v462_v33 = vsel %vm428_vm3, %v423_v30, 0.0  ;;  %v487_v34 = vsel %vm411_vm2, 0.0, %v2225_v19  ;;  %v2255_v35 = vadd.f32 %v1715_v51, %v2113_v16 }
  0xff   : > { %500 = vadd.xlane.f32.xlu0 %v499_v54  ;;  %v488_v36 = vsel %vm411_vm2, 0.0, %v2233_v24  ;;  %v424_v37 = vsel %vm411_vm2, %v2247_v31, 0.0  ;;  %v523_v38 = vsel %vm428_vm3, %v487_v34, 0.0  ;;  %v2266_v40 = vadd.f32 %v397_v53, %v2113_v16 }
 0x100   : > { %503 = vadd.xlane.f32.xlu1 %v502_v56  ;;  %v526_v39 = vsel %vm428_vm3, %v488_v36, 0.0  ;;  %v465_v41 = vsel %vm428_vm3, %v424_v37, 0.0  ;;  %v427_v43 = vsel %vm411_vm2, %v2255_v35, 0.0  ;;  %v2274_v44 = vadd.f32 %v2158_v45, %v2113_v16 }
 0x101   : > { %v474_v46 = vsel %vm428_vm3, %v427_v43, 0.0  ;;  %v489_v47 = vsel %vm411_vm2, 0.0, %v2247_v31  ;;  %v425_v48 = vsel %vm411_vm2, %v2266_v40, 0.0  ;;  %v490_v45 = vsel %vm411_vm2, 0.0, %v2266_v40 }
 0x102   : > { %v529_v50 = vsel %vm428_vm3, %v489_v47, 0.0  ;;  %v468_v51 = vsel %vm428_vm3, %v425_v48, 0.0  ;;  %v426_v16 = vsel %vm411_vm2, %v2274_v44, 0.0  ;;  %v532_v53 = vsel %vm428_vm3, %v490_v45, 0.0 }
 0x103   : > { %448 = vadd.xlane.f32.xlu0 %v447_v58  ;;  %v471_v52 = vsel %vm428_vm3, %v426_v16, 0.0  ;;  %v491_v54 = vsel %vm411_vm2, 0.0, %v2274_v44  ;;  %v492_v56 = vsel %vm411_vm2, 0.0, %v2255_v35 }
 0x104   : > { %451 = vadd.xlane.f32.xlu1 %v450_v60  ;;  %v535_v58 = vsel %vm428_vm3, %v491_v54, 0.0  ;;  %v538_v59 = vsel %vm428_vm3, %v492_v56, 0.0 }
 0x107   : > { %442 = vadd.xlane.f32.xlu0 %v441_v63 }
 0x108   : > { %445 = vadd.xlane.f32.xlu1 %v444_v0 }
 0x10b   : > { %506 = vadd.xlane.f32.xlu0 %v505_v3 }
 0x10c   : > { %509 = vadd.xlane.f32.xlu1 %v508_v5 }
 0x10f   : > { %512 = vadd.xlane.f32.xlu0 %v511_v9 }
 0x110   : > { %515 = vadd.xlane.f32.xlu1 %v514_v10 }
 0x113   : > { %454 = vadd.xlane.f32.xlu0 %v453_v17 }
 0x114   : > { %457 = vadd.xlane.f32.xlu1 %v456_v21 }
 0x117   : > { %518 = vadd.xlane.f32.xlu0 %v517_v26 }
 0x118   : > { %521 = vadd.xlane.f32.xlu1 %v520_v27 }
 0x11b   : > { %460 = vadd.xlane.f32.xlu0 %v459_v32 }
 0x11c   : > { %463 = vadd.xlane.f32.xlu1 %v462_v33 }
 0x11f   : > { %524 = vadd.xlane.f32.xlu0 %v523_v38 }
 0x120   : > { %527 = vadd.xlane.f32.xlu1 %v526_v39 }
 0x123   : > { %466 = vadd.xlane.f32.xlu0 %v465_v41 }
 0x124   : > { %475 = vadd.xlane.f32.xlu1 %v474_v46 }
 0x127   : > { %530 = vadd.xlane.f32.xlu0 %v529_v50 }
 0x128   : > { %469 = vadd.xlane.f32.xlu1 %v468_v51 }
 0x12b   : > { %472 = vadd.xlane.f32.xlu0 %v471_v52 }
 0x12c   : > { %533 = vadd.xlane.f32.xlu1 %v532_v53 }
 0x12f   : > { %536 = vadd.xlane.f32.xlu0 %v535_v58 }
 0x130   : > { %539 = vadd.xlane.f32.xlu1 %v538_v59 }
 0x180   : > { %v437_v60 = vpop.xlane.xlu0 %436 }
 0x181   : > { %v495_v61 = vpop.xlane.xlu1 %494  ;;  %v543_v11 = vmul.f32 0.03125, %v437_v60 }
 0x182   : > { %v557_v2 = vmul.f32 0.03125, %v495_v61 }
 0x184   : > { %v431_v62 = vpop.xlane.xlu0 %430 }
 0x185   : > { %v440_v63 = vpop.xlane.xlu1 %439  ;;  %v541_v0 = vmul.f32 0.03125, %v431_v62 }
 0x186   : > { %v544_v21 = vmul.f32 0.03125, %v440_v63 }
 0x187   : > { %v573_v8 = vsel %vm411_vm2, %v541_v0, %v557_v2 }
 0x188   : > { %v434_v1 = vpop.xlane.xlu0 %433  ;;  %v2306_v25 = vsub.f32 %v2120_v20, %v573_v8 }
 0x189   : > { %v542_v3 = vmul.f32 0.03125, %v434_v1  ;;  %v498_v5 = vpop.xlane.xlu1 %497 }
 0x18a   : > { %v558_v6 = vmul.f32 0.03125, %v498_v5  ;;  %v605_v36 = vmul.f32 %v2306_v25, %v2306_v25 }
 0x18c   : > { %v574_v9 = vsel %vm411_vm2, %v542_v3, %v558_v6  ;;  %v501_v10 = vpop.xlane.xlu0 %500  ;;  %v621_v46 = vsel %vm411_vm2, %v605_v36, 0.0  ;;  %v685_v56 = vsel %vm411_vm2, 0.0, %v605_v36 }
 0x18d   : > { %v559_v13 = vmul.f32 0.03125, %v501_v10  ;;  %v504_v17 = vpop.xlane.xlu1 %503  ;;  %v2311_v27 = vsub.f32 %v2135_v28, %v574_v9  ;;  %v637_v45 = vsel %vm428_vm3, %v621_v46, 0.0  ;;  %v701_v2 = vsel %vm428_vm3, %v685_v56, 0.0 }
 0x18e   : > { %v560_v23 = vmul.f32 0.03125, %v504_v17 }
 0x18f   : > { %v575_v26 = vsel %vm411_vm2, %v543_v11, %v559_v13  ;;  %v606_v37 = vmul.f32 %v2311_v27, %v2311_v27 }
 0x190   : > { %v576_v29 = vsel %vm411_vm2, %v544_v21, %v560_v23  ;;  %v449_v30 = vpop.xlane.xlu0 %448  ;;  %v2316_v32 = vsub.f32 %v2117_v18, %v575_v26 }
 0x191   : > { %v452_v33 = vpop.xlane.xlu1 %451  ;;  %v2319_v34 = vsub.f32 %v2123_v22, %v576_v29  ;;  %v622_v47 = vsel %vm411_vm2, %v606_v37, 0.0  ;;  %v686_v59 = vsel %vm411_vm2, 0.0, %v606_v37  ;;  %v547_v62 = vmul.f32 0.03125, %v449_v30 }
 0x192   : > { %v607_v20 = vmul.f32 %v2316_v32, %v2316_v32  ;;  %v640_v54 = vsel %vm428_vm3, %v622_v47, 0.0  ;;  %v548_v63 = vmul.f32 0.03125, %v452_v33  ;;  %v704_v5 = vsel %vm428_vm3, %v686_v59, 0.0 }
 0x193   : > { %v608_v28 = vmul.f32 %v2319_v34, %v2319_v34 }
 0x194   : > { %v443_v38 = vpop.xlane.xlu0 %442  ;;  %v623_v18 = vsel %vm411_vm2, %v607_v20, 0.0  ;;  %v687_v6 = vsel %vm411_vm2, 0.0, %v607_v20 }
 0x195   : > { %v446_v39 = vpop.xlane.xlu1 %445  ;;  %v643_v22 = vsel %vm428_vm3, %v623_v18, 0.0  ;;  %v624_v41 = vsel %vm411_vm2, %v608_v28, 0.0  ;;  %v545_v50 = vmul.f32 0.03125, %v443_v38  ;;  %v688_v10 = vsel %vm411_vm2, 0.0, %v608_v28 }
 0x196   : > { %644 = vadd.xlane.f32.xlu0 %v643_v22  ;;  %v646_v43 = vsel %vm428_vm3, %v624_v41, 0.0  ;;  %v546_v52 = vmul.f32 0.03125, %v446_v39  ;;  %v710_v29 = vsel %vm428_vm3, %v688_v10, 0.0 }
 0x197   : > { %647 = vadd.xlane.f32.xlu1 %v646_v43 }
 0x198   : > { %v507_v48 = vpop.xlane.xlu0 %506 }
 0x199   : > { %v561_v51 = vmul.f32 0.03125, %v507_v48  ;;  %v510_v16 = vpop.xlane.xlu1 %509 }
 0x19a   : > { %v562_v53 = vmul.f32 0.03125, %v510_v16  ;;  %638 = vadd.xlane.f32.xlu0 %v637_v45 }
 0x19b   : > { %v577_v58 = vsel %vm411_vm2, %v545_v50, %v561_v51  ;;  %641 = vadd.xlane.f32.xlu1 %v640_v54 }
 0x19c   : > { %v578_v60 = vsel %vm411_vm2, %v546_v52, %v562_v53  ;;  %v513_v61 = vpop.xlane.xlu0 %512  ;;  %v2354_v8 = vsub.f32 %v2175_v55, %v577_v58  ;;  %v707_v55 = vsel %vm428_vm3, %v687_v6, 0.0 }
 0x19d   : > { %v563_v0 = vmul.f32 0.03125, %v513_v61  ;;  %v516_v1 = vpop.xlane.xlu1 %515  ;;  %v2361_v11 = vsub.f32 %v2179_v57, %v578_v60 }
 0x19e   : > { %v564_v3 = vmul.f32 0.03125, %v516_v1  ;;  %702 = vadd.xlane.f32.xlu0 %v701_v2  ;;  %v609_v30 = vmul.f32 %v2354_v8, %v2354_v8 }
 0x19f   : > { %v579_v9 = vsel %vm411_vm2, %v547_v62, %v563_v0  ;;  %705 = vadd.xlane.f32.xlu1 %v704_v5  ;;  %v610_v33 = vmul.f32 %v2361_v11, %v2361_v11 }
 0x1a0   : > { %v580_v13 = vsel %vm411_vm2, %v548_v63, %v564_v3  ;;  %v455_v17 = vpop.xlane.xlu0 %454  ;;  %v2366_v21 = vsub.f32 %v2155_v42, %v579_v9  ;;  %v625_v43 = vsel %vm411_vm2, %v609_v30, 0.0  ;;  %v689_v52 = vsel %vm411_vm2, 0.0, %v609_v30 }
 0x1a1   : > { %v458_v23 = vpop.xlane.xlu1 %457  ;;  %v2370_v26 = vsub.f32 %v2165_v49, %v580_v13  ;;  %v549_v36 = vmul.f32 0.03125, %v455_v17  ;;  %v626_v47 = vsel %vm411_vm2, %v610_v33, 0.0  ;;  %v649_v16 = vsel %vm428_vm3, %v625_v43, 0.0 }
 0x1a2   : > { %708 = vadd.xlane.f32.xlu0 %v707_v55  ;;  %v611_v57 = vmul.f32 %v2366_v21, %v2366_v21  ;;  %v550_v39 = vmul.f32 0.03125, %v458_v23  ;;  %v652_v45 = vsel %vm428_vm3, %v626_v47, 0.0  ;;  %v690_v53 = vsel %vm411_vm2, 0.0, %v610_v33 }
 0x1a3   : > { %711 = vadd.xlane.f32.xlu1 %v710_v29  ;;  %v612_v42 = vmul.f32 %v2370_v26, %v2370_v26  ;;  %v713_v62 = vsel %vm428_vm3, %v689_v52, 0.0  ;;  %v716_v63 = vsel %vm428_vm3, %v690_v53, 0.0 }
 0x1a4   : > { %v519_v20 = vpop.xlane.xlu0 %518  ;;  %v627_v49 = vsel %vm411_vm2, %v611_v57, 0.0  ;;  %v691_v2 = vsel %vm411_vm2, 0.0, %v611_v57 }
 0x1a5   : > { %v565_v28 = vmul.f32 0.03125, %v519_v20  ;;  %v522_v37 = vpop.xlane.xlu1 %521  ;;  %v655_v38 = vsel %vm428_vm3, %v627_v49, 0.0  ;;  %v628_v18 = vsel %vm411_vm2, %v612_v42, 0.0  ;;  %v692_v3 = vsel %vm411_vm2, 0.0, %v612_v42 }
 0x1a6   : > { %v566_v22 = vmul.f32 0.03125, %v522_v37  ;;  %656 = vadd.xlane.f32.xlu0 %v655_v38  ;;  %v658_v41 = vsel %vm428_vm3, %v628_v18, 0.0  ;;  %v719_v13 = vsel %vm428_vm3, %v691_v2, 0.0  ;;  %v722_v17 = vsel %vm428_vm3, %v692_v3, 0.0 }
 0x1a7   : > { %v581_v46 = vsel %vm411_vm2, %v549_v36, %v565_v28  ;;  %659 = vadd.xlane.f32.xlu1 %v658_v41 }
 0x1a8   : > { %v582_v48 = vsel %vm411_vm2, %v550_v39, %v566_v22  ;;  %v461_v50 = vpop.xlane.xlu0 %460  ;;  %v2402_v54 = vsub.f32 %v2202_v4, %v581_v46 }
 0x1a9   : > { %v464_v51 = vpop.xlane.xlu1 %463  ;;  %v2405_v56 = vsub.f32 %v2209_v7, %v582_v48  ;;  %v551_v59 = vmul.f32 0.03125, %v461_v50 }
 0x1aa   : > { %650 = vadd.xlane.f32.xlu0 %v649_v16  ;;  %v552_v0 = vmul.f32 0.03125, %v464_v51  ;;  %v613_v4 = vmul.f32 %v2402_v54, %v2402_v54  ;;  %v1903_v51 = vld [vmem:[%s2750_s2] sm:$0xff]  }
 0x1ab   : > { %653 = vadd.xlane.f32.xlu1 %v652_v45  ;;  %v614_v5 = vmul.f32 %v2405_v56, %v2405_v56  ;;  %1716 = vmatprep.subr.bf16.mxu1 %v1903_v51 }
 0x1ac   : > { %v525_v58 = vpop.xlane.xlu0 %524  ;;  %v629_v23 = vsel %vm411_vm2, %v613_v4, 0.0  ;;  %1717 = vmatpush3.bf16.msra.mxu1 %v1903_v51 }
 0x1ad   : > { %v567_v60 = vmul.f32 0.03125, %v525_v58  ;;  %v528_v61 = vpop.xlane.xlu1 %527  ;;  %v630_v29 = vsel %vm411_vm2, %v614_v5, 0.0  ;;  %v661_v49 = vsel %vm428_vm3, %v629_v23, 0.0  ;;  %v694_v28 = vsel %vm411_vm2, 0.0, %v614_v5 }
 0x1ae   : > { %v568_v1 = vmul.f32 0.03125, %v528_v61  ;;  %714 = vadd.xlane.f32.xlu0 %v713_v62  ;;  %v664_v36 = vsel %vm428_vm3, %v630_v29, 0.0  ;;  %v728_v41 = vsel %vm428_vm3, %v694_v28, 0.0 }
 0x1af   : > { %v583_v7 = vsel %vm411_vm2, %v551_v59, %v567_v60  ;;  %717 = vadd.xlane.f32.xlu1 %v716_v63 }
 0x1b0   : > { %v584_v6 = vsel %vm411_vm2, %v552_v0, %v568_v1  ;;  %v467_v9 = vpop.xlane.xlu0 %466  ;;  %v2426_v55 = vsub.f32 %v2225_v19, %v583_v7  ;;  %v693_v19 = vsel %vm411_vm2, 0.0, %v613_v4  ;;  %v1904_v4 = vld [vmem:[%s2750_s2 + $0x8] sm:$0xff]  }
 0x1b1   : > { %v476_v10 = vpop.xlane.xlu1 %475  ;;  %v2431_v57 = vsub.f32 %v2233_v24, %v584_v6  ;;  %v553_v42 = vmul.f32 0.03125, %v467_v9  ;;  %v725_v22 = vsel %vm428_vm3, %v693_v19, 0.0  ;;  %1718 = vmatprep.subr.bf16.mxu1 %v1904_v4 }
 0x1b2   : > { %720 = vadd.xlane.f32.xlu0 %v719_v13  ;;  %v615_v37 = vmul.f32 %v2426_v55, %v2426_v55  ;;  %v556_v52 = vmul.f32 0.03125, %v476_v10  ;;  %1719 = vmatpush3.bf16.msra.mxu1 %v1904_v4 }
 0x1b3   : > { %723 = vadd.xlane.f32.xlu1 %v722_v17  ;;  %v616_v38 = vmul.f32 %v2431_v57, %v2431_v57 }
 0x1b4   : > { %v531_v30 = vpop.xlane.xlu0 %530  ;;  %v631_v47 = vsel %vm411_vm2, %v615_v37, 0.0  ;;  %v695_v62 = vsel %vm411_vm2, 0.0, %v615_v37 }
 0x1b5   : > { %v569_v33 = vmul.f32 0.03125, %v531_v30  ;;  %v470_v20 = vpop.xlane.xlu1 %469  ;;  %v632_v50 = vsel %vm411_vm2, %v616_v38, 0.0  ;;  %v667_v60 = vsel %vm428_vm3, %v631_v47, 0.0  ;;  %v696_v1 = vsel %vm411_vm2, 0.0, %v616_v38 }
 0x1b6   : > { %662 = vadd.xlane.f32.xlu0 %v661_v49  ;;  %v554_v43 = vmul.f32 0.03125, %v470_v20  ;;  %v670_v61 = vsel %vm428_vm3, %v632_v50, 0.0  ;;  %v731_v3 = vsel %vm428_vm3, %v695_v62, 0.0  ;;  %v734_v6 = vsel %vm428_vm3, %v696_v1, 0.0 }
 0x1b7   : > { %v585_v24 = vsel %vm411_vm2, %v553_v42, %v569_v33  ;;  %665 = vadd.xlane.f32.xlu1 %v664_v36  ;;  %v1906_v42 = vld [vmem:[%s2750_s2 + $0x18] sm:$0xff]  }
 0x1b8   : > { %v473_v18 = vpop.xlane.xlu0 %472  ;;  %v2450_v48 = vsub.f32 %v2247_v31, %v585_v24 }
 0x1b9   : > { %v534_v39 = vpop.xlane.xlu1 %533  ;;  %v555_v53 = vmul.f32 0.03125, %v473_v18 }
 0x1ba   : > { %v570_v46 = vmul.f32 0.03125, %v534_v39  ;;  %726 = vadd.xlane.f32.xlu0 %v725_v22  ;;  %v617_v63 = vmul.f32 %v2450_v48, %v2450_v48  ;;  %v1907_v22 = vld [vmem:[%s2750_s2 + $0x20] sm:$0xff]  }
 0x1bb   : > { %729 = vadd.xlane.f32.xlu1 %v728_v41  ;;  %1740 = vmatprep.subr.bf16.mxu0 %v1907_v22 }
 0x1bc   : > { %v586_v16 = vsel %vm411_vm2, %v554_v43, %v570_v46  ;;  %v537_v45 = vpop.xlane.xlu0 %536  ;;  %v697_v29 = vsel %vm411_vm2, 0.0, %v617_v63  ;;  %1741 = vmatpush3.bf16.msra.mxu0 %v1907_v22 }
 0x1bd   : > { %v571_v58 = vmul.f32 0.03125, %v537_v45  ;;  %v540_v59 = vpop.xlane.xlu1 %539  ;;  %v2470_v2 = vsub.f32 %v2266_v40, %v586_v16  ;;  %v633_v40 = vsel %vm411_vm2, %v617_v63, 0.0  ;;  %v737_v20 = vsel %vm428_vm3, %v697_v29, 0.0 }
 0x1be   : > { %v572_v31 = vmul.f32 0.03125, %v540_v59  ;;  %668 = vadd.xlane.f32.xlu0 %v667_v60  ;;  %v673_v17 = vsel %vm428_vm3, %v633_v40, 0.0 }
 0x1bf   : > { %v587_v0 = vsel %vm411_vm2, %v555_v53, %v571_v58  ;;  %671 = vadd.xlane.f32.xlu1 %v670_v61  ;;  %v618_v13 = vmul.f32 %v2470_v2, %v2470_v2 }
 0x1c0   : > { %v588_v7 = vsel %vm411_vm2, %v556_v52, %v572_v31  ;;  %v2485_v9 = vsub.f32 %v2274_v44, %v587_v0 }
 0x1c1   : > { %v2479_v5 = vsub.f32 %v2255_v35, %v588_v7  ;;  %v1905_v35 = vld [vmem:[%s2750_s2 + $0x10] sm:$0xff]   ;;  %v634_v33 = vsel %vm411_vm2, %v618_v13, 0.0  ;;  %v698_v19 = vsel %vm411_vm2, 0.0, %v618_v13 }
 0x1c2   : > { %732 = vadd.xlane.f32.xlu0 %v731_v3  ;;  %1720 = vmatprep.subr.bf16.mxu1 %v1905_v35  ;;  %v619_v30 = vmul.f32 %v2485_v9, %v2485_v9  ;;  %v676_v49 = vsel %vm428_vm3, %v634_v33, 0.0  ;;  %v740_v37 = vsel %vm428_vm3, %v698_v19, 0.0 }
 0x1c3   : > { %735 = vadd.xlane.f32.xlu1 %v734_v6  ;;  %v620_v10 = vmul.f32 %v2479_v5, %v2479_v5  ;;  %1721 = vmatpush3.bf16.msra.mxu1 %v1905_v35  ;;  %v847_v35 = vsub.s32 1, %v2102_v12 }
 0x1c4   : > { %1722 = vmatprep.subr.bf16.mxu1 %v1906_v42  ;;  %v635_v36 = vsel %vm411_vm2, %v619_v30, 0.0  ;;  %v699_v24 = vsel %vm411_vm2, 0.0, %v619_v30 }
 0x1c5   : > { %v636_v23 = vsel %vm411_vm2, %v620_v10, 0.0  ;;  %v679_v28 = vsel %vm428_vm3, %v635_v36, 0.0  ;;  %v700_v38 = vsel %vm411_vm2, 0.0, %v620_v10  ;;  %v743_v18 = vsel %vm428_vm3, %v699_v24, 0.0 }
 0x1c6   : > { %674 = vadd.xlane.f32.xlu0 %v673_v17  ;;  %v682_v44 = vsel %vm428_vm3, %v636_v23, 0.0  ;;  %v746_v39 = vsel %vm428_vm3, %v700_v38, 0.0  ;;  %v2535_v29 = vrot.slane %v2108_v14, %v847_v35 }
 0x1c7   : > { %683 = vadd.xlane.f32.xlu1 %v682_v44  ;;  %1723 = vmatpush3.bf16.msra.mxu1 %v1906_v42  ;;  %v867_v44 = vsub.s32 2, %v2102_v12 }
 0x1ca   : > { %738 = vadd.xlane.f32.xlu0 %v737_v20 }
 0x1cb   : > { %677 = vadd.xlane.f32.xlu1 %v676_v49 }
 0x1ce   : > { %680 = vadd.xlane.f32.xlu0 %v679_v28  ;;  %v2539_v28 = vrot.slane %v2108_v14, %v867_v44 }
 0x1cf   : > { %741 = vadd.xlane.f32.xlu1 %v740_v37 }
 0x1d2   : > { %744 = vadd.xlane.f32.xlu0 %v743_v18 }
 0x1d3   : > { %747 = vadd.xlane.f32.xlu1 %v746_v39 }
 0x223   : > { %v645_v41 = vpop.xlane.xlu0 %644 }
 0x224   : > { %v648_v43 = vpop.xlane.xlu1 %647  ;;  %v751_v61 = vmul.f32 0.03125, %v645_v41 }
 0x225   : > { %v752_v1 = vmul.f32 0.03125, %v648_v43 }
 0x227   : > { %v639_v46 = vpop.xlane.xlu0 %638 }
 0x228   : > { %v642_v47 = vpop.xlane.xlu1 %641  ;;  %v749_v51 = vmul.f32 0.03125, %v639_v46 }
 0x229   : > { %v750_v52 = vmul.f32 0.03125, %v642_v47 }
 0x22b   : > { %v703_v50 = vpop.xlane.xlu0 %702 }
 0x22c   : > { %v765_v16 = vmul.f32 0.03125, %v703_v50  ;;  %v706_v45 = vpop.xlane.xlu1 %705 }
 0x22d   : > { %v766_v53 = vmul.f32 0.03125, %v706_v45 }
 0x22e   : > { %v781_v58 = vsel %vm411_vm2, %v749_v51, %v765_v16 }
 0x22f   : > { %v797_v59 = vadd.f32 1e-05, %v781_v58  ;;  %v782_v60 = vsel %vm411_vm2, %v750_v52, %v766_v53  ;;  %v709_v31 = vpop.xlane.xlu0 %708 }
 0x230   : > { %v798_v62 = vadd.f32 1e-05, %v782_v60  ;;  %v767_v63 = vmul.f32 0.03125, %v709_v31  ;;  %v712_v0 = vpop.xlane.xlu1 %711 }
 0x231   : > { %1909 = vrsqrt.f32 %v797_v59  ;;  %v768_v4 = vmul.f32 0.03125, %v712_v0 }
 0x232   : > { %1911 = vrsqrt.f32 %v798_v62  ;;  %v783_v7 = vsel %vm411_vm2, %v751_v61, %v767_v63 }
 0x233   : > { %v799_v3 = vadd.f32 1e-05, %v783_v7  ;;  %v784_v6 = vsel %vm411_vm2, %v752_v1, %v768_v4  ;;  %v657_v40 = vpop.xlane.xlu0 %656 }
 0x234   : > { %v800_v10 = vadd.f32 1e-05, %v784_v6  ;;  %v660_v13 = vpop.xlane.xlu1 %659  ;;  %v755_v18 = vmul.f32 0.03125, %v657_v40 }
 0x235   : > { %1913 = vrsqrt.f32 %v799_v3  ;;  %v756_v43 = vmul.f32 0.03125, %v660_v13 }
 0x236   : > { %1915 = vrsqrt.f32 %v800_v10 }
 0x237   : > { %v651_v17 = vpop.xlane.xlu0 %650 }
 0x238   : > { %v654_v23 = vpop.xlane.xlu1 %653  ;;  %v753_v20 = vmul.f32 0.03125, %v651_v17 }
 0x239   : > { %v754_v37 = vmul.f32 0.03125, %v654_v23 }
 0x23b   : > { %v1910_v30 = vpop.eup %1909  ;;  %v715_v42 = vpop.xlane.xlu0 %714 }
 0x23c   : > { %v1912_v33 = vpop.eup %1911  ;;  %v769_v49 = vmul.f32 0.03125, %v715_v42  ;;  %v718_v36 = vpop.xlane.xlu1 %717  ;;  %v829_v19 = vmul.f32 %v1910_v30, %v2306_v25 }
 0x23d   : > { %v770_v24 = vmul.f32 0.03125, %v718_v36  ;;  %v830_v38 = vmul.f32 %v1912_v33, %v2311_v27 }
 0x23e   : > { %v785_v39 = vsel %vm411_vm2, %v753_v20, %v769_v49  ;;  %v849_v22 = vmul.f32 %v2535_v29, %v829_v19 }
 0x23f   : > { %v1914_v41 = vpop.eup %1913  ;;  %v801_v46 = vadd.f32 1e-05, %v785_v39  ;;  %v786_v47 = vsel %vm411_vm2, %v754_v37, %v770_v24  ;;  %v721_v25 = vpop.xlane.xlu0 %720  ;;  %v850_v14 = vmul.f32 %v2535_v29, %v830_v38 }
 0x240   : > { %v1916_v50 = vpop.eup %1915  ;;  %v831_v51 = vmul.f32 %v1914_v41, %v2316_v32  ;;  %v802_v16 = vadd.f32 1e-05, %v786_v47  ;;  %v771_v27 = vmul.f32 0.03125, %v721_v25  ;;  %v724_v45 = vpop.xlane.xlu1 %723  ;;  %v869_v52 = vadd.f32 %v2539_v28, %v849_v22 }
 0x241   : > { %v832_v53 = vmul.f32 %v1916_v50, %v2319_v34  ;;  %1917 = vrsqrt.f32 %v801_v46  ;;  %v772_v58 = vmul.f32 0.03125, %v724_v45  ;;  %v870_v59 = vadd.f32 %v2539_v28, %v850_v14 }
 0x242   : > { %v851_v60 = vmul.f32 %v2535_v29, %v831_v51  ;;  %1919 = vrsqrt.f32 %v802_v16  ;;  %v787_v31 = vsel %vm411_vm2, %v755_v18, %v771_v27  ;;  %v885_v61 = vmax.f32 %v869_v52, 0.0 }
 0x243   : > { %v852_v32 = vmul.f32 %v2535_v29, %v832_v53  ;;  %v803_v62 = vadd.f32 1e-05, %v787_v31  ;;  %v788_v63 = vsel %vm411_vm2, %v756_v43, %v772_v58  ;;  %v663_v0 = vpop.xlane.xlu0 %662  ;;  %v886_v1 = vmax.f32 %v870_v59, 0.0 }
 0x244   : > { %v804_v34 = vadd.f32 1e-05, %v788_v63  ;;  %v666_v4 = vpop.xlane.xlu1 %665  ;;  %v871_v7 = vadd.f32 %v2539_v28, %v851_v60  ;;  %v757_v35 = vmul.f32 0.03125, %v663_v0 }
 0x245   : > { %1921 = vrsqrt.f32 %v803_v62  ;;  %v901_v3 = vpack.c.bf16 %v886_v1, %v885_v61  ;;  %v872_v6 = vadd.f32 %v2539_v28, %v852_v32  ;;  %v758_v44 = vmul.f32 0.03125, %v666_v4 }
 0x246   : > { %1923 = vrsqrt.f32 %v804_v34  ;;  %v887_v40 = vmax.f32 %v871_v7, 0.0 }
 0x247   : > { %1724 = vmatprep.mubr.msk.bf16.mxu1 %vm428_vm3, %v901_v3  ;;  %v727_v10 = vpop.xlane.xlu0 %726  ;;  %v888_v13 = vmax.f32 %v872_v6, 0.0 }
 0x248   : > { %v773_v17 = vmul.f32 0.03125, %v727_v10  ;;  %v730_v23 = vpop.xlane.xlu1 %729 }
 0x249   : > { %v774_v30 = vmul.f32 0.03125, %v730_v23  ;;  %v902_v42 = vpack.c.bf16 %v888_v13, %v887_v40 }
 0x24a   : > { %v789_v33 = vsel %vm411_vm2, %v757_v35, %v773_v17 }
 0x24b   : > { %v1918_v20 = vpop.eup %1917  ;;  %v805_v49 = vadd.f32 1e-05, %v789_v33  ;;  %v790_v36 = vsel %vm411_vm2, %v758_v44, %v774_v30  ;;  %1725 = vmatmul.mubr.msk.bf16.vlgmr.msra.gmra.mrb[8].mxu1 %vm428_vm3, %v902_v42  ;;  %v669_v19 = vpop.xlane.xlu0 %668 }
 0x24c   : > { %v1920_v37 = vpop.eup %1919  ;;  %v806_v24 = vadd.f32 1e-05, %v790_v36  ;;  %v672_v38 = vpop.xlane.xlu1 %671  ;;  %v833_v18 = vmul.f32 %v1918_v20, %v2354_v8  ;;  %v759_v25 = vmul.f32 0.03125, %v669_v19 }
 0x24d   : > { %1925 = vrsqrt.f32 %v805_v49  ;;  %v834_v39 = vmul.f32 %v1920_v37, %v2361_v11  ;;  %v760_v27 = vmul.f32 0.03125, %v672_v38 }
 0x24e   : > { %1927 = vrsqrt.f32 %v806_v24  ;;  %v853_v22 = vmul.f32 %v2535_v29, %v833_v18 }
 0x24f   : > { %v1922_v41 = vpop.eup %1921  ;;  %v733_v43 = vpop.xlane.xlu0 %732  ;;  %v854_v46 = vmul.f32 %v2535_v29, %v834_v39 }
 0x250   : > { %v1924_v47 = vpop.eup %1923  ;;  %v775_v14 = vmul.f32 0.03125, %v733_v43  ;;  %v736_v50 = vpop.xlane.xlu1 %735  ;;  %v873_v51 = vadd.f32 %v2539_v28, %v853_v22  ;;  %v835_v16 = vmul.f32 %v1922_v41, %v2366_v21 }
 0x251   : > { %v776_v8 = vmul.f32 0.03125, %v736_v50  ;;  %v874_v45 = vadd.f32 %v2539_v28, %v854_v46  ;;  %v836_v11 = vmul.f32 %v1924_v47, %v2370_v26 }
 0x252   : > { %v791_v52 = vsel %vm411_vm2, %v759_v25, %v775_v14  ;;  %v889_v53 = vmax.f32 %v873_v51, 0.0  ;;  %v855_v58 = vmul.f32 %v2535_v29, %v835_v16 }
 0x253   : > { %v807_v59 = vadd.f32 1e-05, %v791_v52  ;;  %v792_v60 = vsel %vm411_vm2, %v760_v27, %v776_v8  ;;  %v675_v31 = vpop.xlane.xlu0 %674  ;;  %v890_v61 = vmax.f32 %v874_v45, 0.0  ;;  %v856_v21 = vmul.f32 %v2535_v29, %v836_v11 }
 0x254   : > { %v808_v32 = vadd.f32 1e-05, %v792_v60  ;;  %v684_v62 = vpop.xlane.xlu1 %683  ;;  %v875_v63 = vadd.f32 %v2539_v28, %v855_v58  ;;  %v761_v6 = vmul.f32 0.03125, %v675_v31 }
 0x255   : > { %1929 = vrsqrt.f32 %v807_v59  ;;  %v903_v26 = vpack.c.bf16 %v890_v61, %v889_v53  ;;  %v876_v0 = vadd.f32 %v2539_v28, %v856_v21  ;;  %v764_v25 = vmul.f32 0.03125, %v684_v62 }
 0x256   : > { %1931 = vrsqrt.f32 %v808_v32  ;;  %v891_v1 = vmax.f32 %v875_v63, 0.0 }
 0x257   : > { %v1926_v34 = vpop.eup %1925  ;;  %1728 = vmatprep.mubr.msk.bf16.mxu1 %vm428_vm3, %v903_v26  ;;  %v739_v4 = vpop.xlane.xlu0 %738  ;;  %v892_v7 = vmax.f32 %v876_v0, 0.0 }
 0x258   : > { %v1928_v3 = vpop.eup %1927  ;;  %v777_v40 = vmul.f32 0.03125, %v739_v4  ;;  %v678_v10 = vpop.xlane.xlu1 %677  ;;  %v837_v13 = vmul.f32 %v1926_v34, %v2402_v54 }
 0x259   : > { %v904_v35 = vpack.c.bf16 %v892_v7, %v891_v1  ;;  %v838_v17 = vmul.f32 %v1928_v3, %v2405_v56  ;;  %v762_v36 = vmul.f32 0.03125, %v678_v10 }
 0x25a   : > { %v793_v23 = vsel %vm411_vm2, %v761_v6, %v777_v40  ;;  %v857_v44 = vmul.f32 %v2535_v29, %v837_v13 }
 0x25b   : > { %v809_v30 = vadd.f32 1e-05, %v793_v23  ;;  %1729 = vmatmul.mubr.msk.bf16.gmra.mrb[12].mxu1 %vm428_vm3, %v904_v35  ;;  %v681_v42 = vpop.xlane.xlu0 %680  ;;  %v858_v33 = vmul.f32 %v2535_v29, %v838_v17  ;;  %v2627_v35 = vld [vmem:[%s2751_s3] sm:$0xff] }
 0x25c   : > { %v742_v20 = vpop.xlane.xlu1 %741  ;;  %v877_v49 = vadd.f32 %v2539_v28, %v857_v44  ;;  %v763_v22 = vmul.f32 0.03125, %v681_v42 }
 0x25d   : > { %1933 = vrsqrt.f32 %v809_v30  ;;  %v778_v54 = vmul.f32 0.03125, %v742_v20  ;;  %v878_v19 = vadd.f32 %v2539_v28, %v858_v33 }
 0x25e   : > { %v893_v56 = vmax.f32 %v877_v49, 0.0 }
 0x25f   : > { %v1930_v37 = vpop.eup %1929  ;;  %v794_v24 = vsel %vm411_vm2, %v762_v36, %v778_v54  ;;  %v745_v38 = vpop.xlane.xlu0 %744  ;;  %v894_v18 = vmax.f32 %v878_v19, 0.0 }
 0x260   : > { %v1932_v39 = vpop.eup %1931  ;;  %v810_v41 = vadd.f32 1e-05, %v794_v24  ;;  %v779_v43 = vmul.f32 0.03125, %v745_v38  ;;  %v748_v46 = vpop.xlane.xlu1 %747  ;;  %v839_v47 = vmul.f32 %v1930_v37, %v2426_v55 }
 0x261   : > { %v780_v14 = vmul.f32 0.03125, %v748_v46  ;;  %v905_v50 = vpack.c.bf16 %v894_v18, %v893_v56  ;;  %v840_v51 = vmul.f32 %v1932_v39, %v2431_v57 }
 0x262   : > { %1935 = vrsqrt.f32 %v810_v41  ;;  %v795_v16 = vsel %vm411_vm2, %v763_v22, %v779_v43  ;;  %v859_v27 = vmul.f32 %v2535_v29, %v839_v47 }
 0x263   : > { %v811_v8 = vadd.f32 1e-05, %v795_v16  ;;  %v796_v45 = vsel %vm411_vm2, %v764_v25, %v780_v14  ;;  %1732 = vmatprep.mubr.msk.bf16.mxu1 %vm428_vm3, %v905_v50  ;;  %v860_v11 = vmul.f32 %v2535_v29, %v840_v51 }
 0x264   : > { %v812_v55 = vadd.f32 1e-05, %v796_v45  ;;  %v879_v52 = vadd.f32 %v2539_v28, %v859_v27 }
 0x265   : > { %1937 = vrsqrt.f32 %v811_v8  ;;  %v880_v57 = vadd.f32 %v2539_v28, %v860_v11 }
 0x266   : > { %1939 = vrsqrt.f32 %v812_v55  ;;  %v895_v53 = vmax.f32 %v879_v52, 0.0 }
 0x267   : > { %v1934_v58 = vpop.eup %1933  ;;  %v896_v59 = vmax.f32 %v880_v57, 0.0 }
 0x268   : > { %v841_v60 = vmul.f32 %v1934_v58, %v2450_v48 }
 0x269   : > { %v906_v31 = vpack.c.bf16 %v896_v59, %v895_v53 }
 0x26a   : > { %v861_v15 = vmul.f32 %v2535_v29, %v841_v60 }
 0x26b   : > { %1733 = vmatmul.mubr.msk.bf16.gmra.mrb[16].mxu1 %vm428_vm3, %v906_v31 }
 0x26c   : > { %v1936_v61 = vpop.eup %1935  ;;  %v881_v63 = vadd.f32 %v2539_v28, %v861_v15 }
 0x26d   : > { %v842_v21 = vmul.f32 %v1936_v61, %v2470_v2  ;;  %v1068_v61 = vsub.s32 4, %v2102_v12 }
 0x26e   : > { %v897_v4 = vmax.f32 %v881_v63, 0.0 }
 0x26f   : > { %v1938_v32 = vpop.eup %1937  ;;  %v862_v62 = vmul.f32 %v2535_v29, %v842_v21  ;;  %v1069_v21 = vrot.slane %v2627_v35, %v1068_v61 }
 0x270   : > { %v1940_v26 = vpop.eup %1939  ;;  %v843_v0 = vmul.f32 %v1938_v32, %v2485_v9 }
 0x271   : > { %v882_v1 = vadd.f32 %v2539_v28, %v862_v62  ;;  %v844_v48 = vmul.f32 %v1940_v26, %v2479_v5  ;;  %v1908_v5 = vld [vmem:[%s2750_s2 + $0x28] sm:$0xff]  }
 0x272   : > { %v863_v34 = vmul.f32 %v2535_v29, %v843_v0  ;;  %1758 = vmatprep.subr.bf16.mxu1 %v1908_v5 }
 0x273   : > { %v898_v7 = vmax.f32 %v882_v1, 0.0  ;;  %v864_v3 = vmul.f32 %v2535_v29, %v844_v48  ;;  %1759 = vmatpush3.bf16.msra.mxu1 %v1908_v5  ;;  %v911_v29 = vsub.s32 3, %v2102_v12 }
 0x274   : > { %v883_v2 = vadd.f32 %v2539_v28, %v863_v34 }
 0x275   : > { %v907_v6 = vpack.c.bf16 %v898_v7, %v897_v4  ;;  %v884_v40 = vadd.f32 %v2539_v28, %v864_v3  ;;  %v912_v28 = vrot.slane %v2627_v35, %v911_v29 }
 0x276   : > { %v899_v10 = vmax.f32 %v883_v2, 0.0 }
 0x277   : > { %1736 = vmatprep.mubr.msk.bf16.mxu1 %vm428_vm3, %v907_v6  ;;  %v900_v13 = vmax.f32 %v884_v40, 0.0 }
 0x279   : > { %v908_v9 = vpack.c.bf16 %v900_v13, %v899_v10 }
 0x27b   : > { %1737 = vmatmul.mubr.msk.bf16.gmra.mrb[20].mxu1 %vm428_vm3, %v908_v9 }
 0x31e   : > { %v1726_v17 = vpop.f32.mrb[8].mxu1 }
 0x31f   : > { %v995_v23 = vpop.f32.mrb[9].mxu1  ;;  %v1004_v30 = vadd.f32 %v1726_v17, %v912_v28 }
 0x320   : > { %v1727_v44 = vpop.f32.mrb[10].mxu1  ;;  %v996_v20 = vadd.f32 %v995_v23, %v912_v28 }
 0x321   : > { %v1007_v42 = vadd.f32 %v1727_v44, %v912_v28  ;;  %v998_v33 = vpop.f32.mrb[11].mxu1 }
 0x322   : > { %v999_v49 = vadd.f32 %v998_v33, %v912_v28 }
 0x323   : > { %v1059_v36 = vpack.c.bf16 %v1007_v42, %v1004_v30 }
 0x324   : > { %v1058_v54 = vpack.c.bf16 %v999_v49, %v996_v20 }
 0x326   : > { %1742 = vmatprep.mubr.msk.bf16.mxu0 %vm1076_vm4, %v1058_v54 }
 0x327   : > { %1743 = vmatmul.mubr.msk.bf16.vlgmr.msra.gmra.mrb[8].mxu0 %vm1076_vm4, %v1059_v36 }
 0x32e   : > { %v1730_v19 = vpop.f32.mrb[12].mxu1 }
 0x32f   : > { %v1011_v56 = vpop.f32.mrb[13].mxu1  ;;  %v1020_v24 = vadd.f32 %v1730_v19, %v912_v28 }
 0x330   : > { %v1731_v37 = vpop.f32.mrb[14].mxu1  ;;  %v1012_v39 = vadd.f32 %v1011_v56, %v912_v28 }
 0x331   : > { %v1023_v38 = vadd.f32 %v1731_v37, %v912_v28  ;;  %v1014_v18 = vpop.f32.mrb[15].mxu1 }
 0x332   : > { %v1015_v22 = vadd.f32 %v1014_v18, %v912_v28 }
 0x333   : > { %v1061_v41 = vpack.c.bf16 %v1023_v38, %v1020_v24 }
 0x334   : > { %v1060_v43 = vpack.c.bf16 %v1015_v22, %v1012_v39 }
 0x336   : > { %1746 = vmatprep.mubr.msk.bf16.mxu0 %vm1076_vm4, %v1060_v43 }
 0x337   : > { %1747 = vmatmul.mubr.msk.bf16.gmra.mrb[12].mxu0 %vm1076_vm4, %v1061_v41 }
 0x33e   : > { %v1734_v46 = vpop.f32.mrb[16].mxu1 }
 0x33f   : > { %v1027_v47 = vpop.f32.mrb[17].mxu1  ;;  %v1036_v14 = vadd.f32 %v1734_v46, %v912_v28 }
 0x340   : > { %v1735_v25 = vpop.f32.mrb[18].mxu1  ;;  %v1028_v16 = vadd.f32 %v1027_v47, %v912_v28 }
 0x341   : > { %v1039_v50 = vadd.f32 %v1735_v25, %v912_v28  ;;  %v1030_v51 = vpop.f32.mrb[19].mxu1 }
 0x342   : > { %v1031_v27 = vadd.f32 %v1030_v51, %v912_v28 }
 0x343   : > { %v1063_v8 = vpack.c.bf16 %v1039_v50, %v1036_v14 }
 0x344   : > { %v1062_v45 = vpack.c.bf16 %v1031_v27, %v1028_v16 }
 0x346   : > { %1750 = vmatprep.mubr.msk.bf16.mxu0 %vm1076_vm4, %v1062_v45 }
 0x347   : > { %1751 = vmatmul.mubr.msk.bf16.gmra.mrb[16].mxu0 %vm1076_vm4, %v1063_v8 }
 0x34e   : > { %v1738_v11 = vpop.f32.mrb[20].mxu1 }
 0x34f   : > { %v1043_v55 = vpop.f32.mrb[21].mxu1  ;;  %v1052_v57 = vadd.f32 %v1738_v11, %v912_v28 }
 0x350   : > { %v1739_v52 = vpop.f32.mrb[22].mxu1  ;;  %v1044_v59 = vadd.f32 %v1043_v55, %v912_v28 }
 0x351   : > { %v1055_v53 = vadd.f32 %v1739_v52, %v912_v28  ;;  %v1046_v58 = vpop.f32.mrb[23].mxu1 }
 0x352   : > { %v1047_v60 = vadd.f32 %v1046_v58, %v912_v28 }
 0x353   : > { %v1065_v31 = vpack.c.bf16 %v1055_v53, %v1052_v57 }
 0x354   : > { %v1064_v15 = vpack.c.bf16 %v1047_v60, %v1044_v59  ;;  %v2006_v59 = vmov 0.0|0.0   ;;  %v2008_v60 = vmov 0.0  }
 0x355   : > { %1811 = vmatprep.subr.bf16.mxu0 %v2006_v59 }
 0x356   : > { %1754 = vmatprep.mubr.msk.bf16.mxu0 %vm1076_vm4, %v1064_v15  ;;  %v1224_v15 = vsub.s32 5, %v2102_v12 }
 0x357   : > { %1755 = vmatmul.mubr.msk.bf16.gmra.mrb[20].mxu0 %vm1076_vm4, %v1065_v31  ;;  %v2009_v31 = vmov 0  }
 0x358   : > { %1808 = vmatprep.mubr.msk.f32.mxu0 %vm2007_vm5, %v2008_v60  ;;  %1892 = vset.pattern.permute.xlu0 %v2009_v31  ;;  %v2652_v61 = vrot.slane %v2627_v35, %v1224_v15 }
 0x359   : > { %1371 = vperm.xlu0 %1892, %v2627_v35  }
 0x3d8   : > { %v1372_v60 = vpop.permute.xlu0 %1371 }
 0x3d9   : > { %v1374_v31 = vrot.slane %v1372_v60, 7 }
 0x3fa   : > { %v1744_v32 = vpop.f32.mrb[8].mxu0 }
 0x3fb   : > { %v1144_v62 = vadd.f32 %v1744_v32, %v1069_v21  ;;  %v1135_v63 = vpop.f32.mrb[9].mxu0 }
 0x3fc   : > { %v1136_v26 = vadd.f32 %v1135_v63, %v1069_v21  ;;  %v1745_v0 = vpop.f32.mrb[10].mxu0 }
 0x3fd   : > { %v1147_v1 = vadd.f32 %v1745_v0, %v1069_v21  ;;  %v1138_v48 = vpop.f32.mrb[11].mxu0  ;;  %v1200_v4 = vmax.f32 %v1144_v62, 0.0 }
 0x3fe   : > { %v1139_v34 = vadd.f32 %v1138_v48, %v1069_v21  ;;  %v1198_v3 = vmax.f32 %v1136_v26, 0.0 }
 0x3ff   : > { %v1201_v7 = vmax.f32 %v1147_v1, 0.0 }
 0x400   : > { %v1199_v2 = vmax.f32 %v1139_v34, 0.0 }
 0x401   : > { %v1215_v6 = vpack.c.bf16 %v1201_v7, %v1200_v4 }
 0x402   : > { %v1214_v40 = vpack.c.bf16 %v1199_v2, %v1198_v3 }
 0x404   : > { %1760 = vmatprep.mubr.msk.bf16.mxu1 %vm1076_vm4, %v1214_v40 }
 0x405   : > { %1761 = vmatmul.mubr.msk.bf16.vlgmr.msra.gmra.mrb[24].mxu1 %vm1076_vm4, %v1215_v6 }
 0x40a   : > { %v1748_v10 = vpop.f32.mrb[12].mxu0 }
 0x40b   : > { %v1160_v13 = vadd.f32 %v1748_v10, %v1069_v21  ;;  %v1151_v9 = vpop.f32.mrb[13].mxu0 }
 0x40c   : > { %v1152_v5 = vadd.f32 %v1151_v9, %v1069_v21  ;;  %v1749_v29 = vpop.f32.mrb[14].mxu0 }
 0x40d   : > { %v1163_v28 = vadd.f32 %v1749_v29, %v1069_v21  ;;  %v1154_v17 = vpop.f32.mrb[15].mxu0  ;;  %v1204_v44 = vmax.f32 %v1160_v13, 0.0 }
 0x40e   : > { %v1155_v23 = vadd.f32 %v1154_v17, %v1069_v21  ;;  %v1202_v42 = vmax.f32 %v1152_v5, 0.0 }
 0x40f   : > { %v1205_v30 = vmax.f32 %v1163_v28, 0.0 }
 0x410   : > { %v1203_v33 = vmax.f32 %v1155_v23, 0.0 }
 0x411   : > { %v1217_v20 = vpack.c.bf16 %v1205_v30, %v1204_v44 }
 0x412   : > { %v1216_v49 = vpack.c.bf16 %v1203_v33, %v1202_v42 }
 0x414   : > { %1764 = vmatprep.mubr.msk.bf16.mxu1 %vm1076_vm4, %v1216_v49 }
 0x415   : > { %1765 = vmatmul.mubr.msk.bf16.gmra.mrb[28].mxu1 %vm1076_vm4, %v1217_v20 }
 0x41a   : > { %v1752_v36 = vpop.f32.mrb[16].mxu0 }
 0x41b   : > { %v1176_v54 = vadd.f32 %v1752_v36, %v1069_v21  ;;  %v1167_v19 = vpop.f32.mrb[17].mxu0 }
 0x41c   : > { %v1168_v56 = vadd.f32 %v1167_v19, %v1069_v21  ;;  %v1753_v37 = vpop.f32.mrb[18].mxu0 }
 0x41d   : > { %v1179_v24 = vadd.f32 %v1753_v37, %v1069_v21  ;;  %v1170_v38 = vpop.f32.mrb[19].mxu0  ;;  %v1208_v39 = vmax.f32 %v1176_v54, 0.0 }
 0x41e   : > { %v1171_v18 = vadd.f32 %v1170_v38, %v1069_v21  ;;  %v1206_v41 = vmax.f32 %v1168_v56, 0.0 }
 0x41f   : > { %v1209_v22 = vmax.f32 %v1179_v24, 0.0 }
 0x420   : > { %v1207_v43 = vmax.f32 %v1171_v18, 0.0 }
 0x421   : > { %v1219_v46 = vpack.c.bf16 %v1209_v22, %v1208_v39 }
 0x422   : > { %v1218_v47 = vpack.c.bf16 %v1207_v43, %v1206_v41 }
 0x424   : > { %1768 = vmatprep.mubr.msk.bf16.mxu1 %vm1076_vm4, %v1218_v47 }
 0x425   : > { %1769 = vmatmul.mubr.msk.bf16.gmra.mrb[32].mxu1 %vm1076_vm4, %v1219_v46 }
 0x42a   : > { %v1756_v25 = vpop.f32.mrb[20].mxu0 }
 0x42b   : > { %v1192_v14 = vadd.f32 %v1756_v25, %v1069_v21  ;;  %v1183_v50 = vpop.f32.mrb[21].mxu0 }
 0x42c   : > { %v1184_v51 = vadd.f32 %v1183_v50, %v1069_v21  ;;  %v1757_v16 = vpop.f32.mrb[22].mxu0 }
 0x42d   : > { %v1195_v27 = vadd.f32 %v1757_v16, %v1069_v21  ;;  %v1186_v8 = vpop.f32.mrb[23].mxu0  ;;  %v1212_v11 = vmax.f32 %v1192_v14, 0.0 }
 0x42e   : > { %v1187_v45 = vadd.f32 %v1186_v8, %v1069_v21  ;;  %v1210_v52 = vmax.f32 %v1184_v51, 0.0 }
 0x42f   : > { %v1213_v55 = vmax.f32 %v1195_v27, 0.0 }
 0x430   : > { %v1211_v57 = vmax.f32 %v1187_v45, 0.0 }
 0x431   : > { %v1221_v53 = vpack.c.bf16 %v1213_v55, %v1212_v11 }
 0x432   : > { %v1220_v58 = vpack.c.bf16 %v1211_v57, %v1210_v52 }
 0x434   : > { %1772 = vmatprep.mubr.msk.bf16.mxu1 %vm1076_vm4, %v1220_v58  ;;  %v1373_v58 = vrot.slane %v2627_v35, 6 }
 0x435   : > { %1773 = vmatmul.mubr.msk.bf16.gmra.mrb[36].mxu1 %vm1076_vm4, %v1221_v53 }
 0x4d8   : > { %v1762_v21 = vpop.f32.mrb[24].mxu1 }
 0x4d9   : > { %v1299_v32 = vadd.f32 %v1762_v21, %v2652_v61  ;;  %v1290_v62 = vpop.f32.mrb[25].mxu1 }
 0x4da   : > { %v1291_v63 = vadd.f32 %v1290_v62, %v2652_v61  ;;  %v1763_v26 = vpop.f32.mrb[26].mxu1 }
 0x4db   : > { %v1302_v0 = vadd.f32 %v1763_v26, %v2652_v61  ;;  %v1293_v1 = vpop.f32.mrb[27].mxu1  ;;  %v1355_v34 = vmax.f32 %v1299_v32, 0.0 }
 0x4dc   : > { %v1294_v48 = vadd.f32 %v1293_v1, %v2652_v61  ;;  %v1353_v7 = vmax.f32 %v1291_v63, 0.0 }
 0x4dd   : > { %v1356_v4 = vmax.f32 %v1302_v0, 0.0 }
 0x4de   : > { %v1354_v3 = vmax.f32 %v1294_v48, 0.0 }
 0x4df   : > { %v1816_v12 = vpack.c.bf16 %v1356_v4, %v1355_v34 }
 0x4e0   : > { %v1812_v6 = vpack.c.bf16 %v1354_v3, %v1353_v7 }
 0x4e2   : > { %1814 = vmatpush3.bf16.xpose.msk.msra.mxu0 %vm2660_vm6, %v1812_v6 }
 0x4e3   : > { %1815 = vmatprep.subr.bf16.mxu0 %v2006_v59 }
 0x4e8   : > { %v1766_v40 = vpop.f32.mrb[28].mxu1 }
 0x4e9   : > { %v1315_v10 = vadd.f32 %v1766_v40, %v2652_v61  ;;  %v1306_v13 = vpop.f32.mrb[29].mxu1 }
 0x4ea   : > { %v1307_v9 = vadd.f32 %v1306_v13, %v2652_v61  ;;  %v1767_v5 = vpop.f32.mrb[30].mxu1  ;;  %1818 = vmatpush3.bf16.xpose.msk.msra.mxu0 %vm2660_vm6, %v1816_v12 }
 0x4eb   : > { %v1318_v29 = vadd.f32 %v1767_v5, %v2652_v61  ;;  %v1309_v28 = vpop.f32.mrb[31].mxu1  ;;  %1819 = vmatprep.subr.bf16.mxu0 %v2006_v59  ;;  %v1359_v23 = vmax.f32 %v1315_v10, 0.0 }
 0x4ec   : > { %v1310_v17 = vadd.f32 %v1309_v28, %v2652_v61  ;;  %v1357_v30 = vmax.f32 %v1307_v9, 0.0 }
 0x4ed   : > { %v1360_v44 = vmax.f32 %v1318_v29, 0.0 }
 0x4ee   : > { %v1358_v42 = vmax.f32 %v1310_v17, 0.0 }
 0x4ef   : > { %v1824_v33 = vpack.c.bf16 %v1360_v44, %v1359_v23 }
 0x4f0   : > { %v1820_v20 = vpack.c.bf16 %v1358_v42, %v1357_v30 }
 0x4f2   : > { %1822 = vmatpush3.bf16.xpose.msk.msra.mxu0 %vm2660_vm6, %v1820_v20 }
 0x4f3   : > { %1823 = vmatprep.subr.bf16.mxu0 %v2006_v59 }
 0x4f8   : > { %v1770_v49 = vpop.f32.mrb[32].mxu1 }
 0x4f9   : > { %v1331_v36 = vadd.f32 %v1770_v49, %v2652_v61  ;;  %v1322_v54 = vpop.f32.mrb[33].mxu1 }
 0x4fa   : > { %v1323_v19 = vadd.f32 %v1322_v54, %v2652_v61  ;;  %v1771_v56 = vpop.f32.mrb[34].mxu1  ;;  %1826 = vmatpush3.bf16.xpose.msk.msra.mxu0 %vm2660_vm6, %v1824_v33 }
 0x4fb   : > { %v1334_v37 = vadd.f32 %v1771_v56, %v2652_v61  ;;  %v1325_v24 = vpop.f32.mrb[35].mxu1  ;;  %1827 = vmatprep.subr.bf16.mxu0 %v2006_v59  ;;  %v1363_v18 = vmax.f32 %v1331_v36, 0.0 }
 0x4fc   : > { %v1326_v38 = vadd.f32 %v1325_v24, %v2652_v61  ;;  %v1361_v22 = vmax.f32 %v1323_v19, 0.0 }
 0x4fd   : > { %v1364_v39 = vmax.f32 %v1334_v37, 0.0 }
 0x4fe   : > { %v1362_v41 = vmax.f32 %v1326_v38, 0.0 }
 0x4ff   : > { %v1832_v43 = vpack.c.bf16 %v1364_v39, %v1363_v18 }
 0x500   : > { %v1828_v46 = vpack.c.bf16 %v1362_v41, %v1361_v22 }
 0x502   : > { %1830 = vmatpush3.bf16.xpose.msk.msra.mxu0 %vm2660_vm6, %v1828_v46 }
 0x503   : > { %1831 = vmatprep.subr.bf16.mxu0 %v2006_v59 }
 0x508   : > { %v1774_v47 = vpop.f32.mrb[36].mxu1 }
 0x509   : > { %v1347_v25 = vadd.f32 %v1774_v47, %v2652_v61  ;;  %v1338_v14 = vpop.f32.mrb[37].mxu1 }
 0x50a   : > { %v1339_v50 = vadd.f32 %v1338_v14, %v2652_v61  ;;  %v1775_v51 = vpop.f32.mrb[38].mxu1  ;;  %1834 = vmatpush3.bf16.xpose.msk.msra.mxu0 %vm2660_vm6, %v1832_v43 }
 0x50b   : > { %v1350_v16 = vadd.f32 %v1775_v51, %v2652_v61  ;;  %v1341_v27 = vpop.f32.mrb[39].mxu1  ;;  %1835 = vmatprep.subr.bf16.mxu0 %v2006_v59  ;;  %v1367_v45 = vmax.f32 %v1347_v25, 0.0 }
 0x50c   : > { %v1342_v8 = vadd.f32 %v1341_v27, %v2652_v61  ;;  %v1365_v55 = vmax.f32 %v1339_v50, 0.0 }
 0x50d   : > { %v1368_v11 = vmax.f32 %v1350_v16, 0.0 }
 0x50e   : > { %v1366_v52 = vmax.f32 %v1342_v8, 0.0 }
 0x50f   : > { %v1840_v57 = vpack.c.bf16 %v1368_v11, %v1367_v45 }
 0x510   : > { %v1836_v53 = vpack.c.bf16 %v1366_v52, %v1365_v55 }
 0x512   : > { %1838 = vmatpush3.bf16.xpose.msk.msra.mxu0 %vm2660_vm6, %v1836_v53 }
 0x513   : > { %1839 = vmatprep.subr.bf16.mxu0 %v2006_v59 }
 0x51a   : > { %1842 = vmatpush3.bf16.xpose.msk.msra.mxu0 %vm2660_vm6, %v1840_v57 }
 0x521   : > { %1809 = vmatmul.mubr.msk.f32.vlgmr.msra.gmra.mrb[24].mxu0 %vm1076_vm4, %v1373_v58 }
 0x5f4   : > { %v1492_v15 = vpop.f32.mrb[24].mxu0 }
 0x5f5   : > { %v1493_v61 = vadd.f32 %v1492_v15, %v1374_v31  ;;  %v1810_v21 = vpop.f32.mrb[25].mxu0 }
 0x5f7   : > { %1496 = vst [vmem:[%s190_s11] sm:$0x1] %v1493_v61 }
 0x5f8   : > { %1955 = shalt.err (!%p1952_p3)
}
 0x5f9   : > { %s1956_s5 = scalar_lea.hbm %s2706_s19, 16  ;;  %s1960_s6 = scalar_lea.hbm %s2752_s4, 32 }
 0x5fa   : > { %p1957_p4 = scmp.ne.s32.totalorder %s2706_s19, %s1956_s5  ;;  %p1961_p9 = scmp.lt.u32.totalorder %s2706_s19, %s2752_s4 }
 0x5fb   : > { %p1962_p10 = scmp.lt.u32.totalorder %s1960_s6, %s1956_s5  ;;  %p1964_p12 = scmp.lt.u32.totalorder %s1956_s5, %s2706_s19 }
 0x5fc   : > { %p1958_p7 = pnand %p1957_p4, %p2071_p5 }
 0x5fd   : > { %p1963_p11 = por %p1962_p10, %p1961_p9 }
 0x5fe   : > { %p1959_p8 = pneg %p1958_p7 }
 0x5ff   : > { %p1965_p13 = por %p1964_p12, %p1963_p11 }
 0x601   : > { %p1966_p0 = pnand %p1965_p13, %p1959_p8 }
 0x603   : > { %1969 = shalt.err (!%p1966_p0)
}
 0x604   : > { %1849 = dma.vmem_to_hbm [thread:$0]  (%p2071_p5), %s2708_s12, 16, %s2706_s19, %s1498_s20  }
 0x605 PF: > { %p1855_p1 = scmp.ge.s32.totalorder %s2004_s18, 2  ;;  %s1522_s9 = sand.u32 1, %s1992_s15  }
 0x606   : > { %s1523_s10 = scalar_lea.sflag [#allocation3], %s1522_s9 }
 0x607   : > { %p1852_p2 = pnand %p1855_p1, %p2075_p6 }
 0x609   : > { %1987 = dma.done.wait (!%p1852_p2), %s1523_s10, 16  }
 0x60a   : > { %1989 = vsyncadd (!%p1852_p2), %s1523_s10, 4294967280  ;;  %p14_p3 = scmp.ge.s32.totalorder %s2059_s21, 4   ;;  %s2757_s15 = smov %s1996_s16 }
 0x60b   : > { %s2758_s16 = smov %s2000_s17  ;;  %s2759_s17 = smov %s2069_s24 }
 0x60c   : > { %s2760_s18 = smov %s2059_s21  ;;  %16 = sbr.rel (!%p14_p3) target bundleno = 3 (0x3), region = 71 }
 0x613   :  { %1527 = vsyncpa [#allocation3], 1 }
 0x614   :  { %1529 = vsyncpa [#allocation3 + $0x1], 1 }

</bundles_post_ra>
